<compile_context>
chip_gen: v5e
topology: v5e:2x2
jax: 0.10.0
libtpu: 0.0.40
codegen_flags: <defaults>
</compile_context>

<pallas_src>
import jax
import jax.numpy as jnp
from jax import lax
from jax.experimental import pallas as pl
from jax.experimental.pallas import tpu as pltpu


# ----------------------------------------------------------------------------
# Fused kernel: 2-hot embedding+x-projection -> biLSTM recurrence -> head.
# ----------------------------------------------------------------------------
def _fused_kernel(ids_ref, embw_ref, b_ref, whh_ref, wfc_ref, bfc_ref,
                  out_ref, xg_scr, lo_scr):
    T, B, G2 = xg_scr.shape            # G2 = 8H (gate-type-major, dir-minor)
    H2 = lo_scr.shape[2]               # 2H
    H = H2 // 2
    V2 = embw_ref.shape[0]             # 2V (fwd-lane rows | bwd-lane rows)
    TB = ids_ref.shape[0]

    # ---- fused embedding + input projection + fwd/bwd time-merge ------------
    # Row tb of the 2-hot matrix selects row ids[t,b] (forward lanes only) and
    # row V + ids[T-1-t,b] (backward lanes only) of the pre-projected table,
    # so xg[tb] already holds the merged per-step x-gates for both directions.
    idf = ids_ref[:, 0:1]                                        # (T*B, 1)
    idb = ids_ref[:, 1:2]                                        # (T*B, 1)
    iota = lax.broadcasted_iota(jnp.int32, (TB, V2), 1)
    twohot = ((iota == idf) | (iota == idb)).astype(jnp.float32)  # (T*B, 2V)
    xg = jnp.dot(twohot, embw_ref[...],
                 preferred_element_type=jnp.float32) + b_ref[...]  # (T*B, 8H)
    xg_scr[...] = xg.reshape(T, B, G2)

    # ---- bidirectional recurrence: unrolled time loop, packed state ---------
    whh = whh_ref[...]                 # (2H, 8H) block-diag per direction
    def step(t, carry):
        h, c = carry                   # packed (B, 2H) = [fwd | bwd] each
        gates = xg_scr[t] + jnp.dot(h, whh,
                                    preferred_element_type=jnp.float32)  # (B, 8H)
        ifo = jax.nn.sigmoid(gates[:, :3 * H2])   # [i | f | o], 6H lanes
        g = jnp.tanh(gates[:, 3 * H2:])           # g gate, 2H lanes
        i_g = ifo[:, 0:H2]
        f_g = ifo[:, H2:2 * H2]
        o_g = ifo[:, 2 * H2:3 * H2]
        c = f_g * c + i_g * g
        h = o_g * jnp.tanh(c)
        lo_scr[t, :, :H] = h[:, :H]               # forward h at time t
        lo_scr[T - 1 - t, :, H:] = h[:, H:]       # backward h at time T-1-t
        return h, c

    z = jnp.zeros((B, H2), jnp.float32)
    lax.fori_loop(0, T, step, (z, z), unroll=True)

    # ---- head: pool over dim 1 (batch, verbatim), FC, softmax (dropout=id) --
    lo = lo_scr[...]                              # (T, B, 2H) == lstm_out
    mean_p = jnp.mean(lo, axis=1)                 # (T, 2H)
    max_p = jnp.max(lo, axis=1)                   # (T, 2H)
    last = lo[:, B - 1, :]                        # (T, 2H)
    # conc = [mean | max | last]; conc @ Wfc == sum of 3 split matmuls.
    logits = (jnp.dot(mean_p, wfc_ref[0 * H2:1 * H2, :], preferred_element_type=jnp.float32)
              + jnp.dot(max_p, wfc_ref[1 * H2:2 * H2, :], preferred_element_type=jnp.float32)
              + jnp.dot(last, wfc_ref[2 * H2:3 * H2, :], preferred_element_type=jnp.float32)
              + bfc_ref[...])                     # (T, O)
    m = jnp.max(logits, axis=1, keepdims=True)
    e = jnp.exp(logits - m)
    out_ref[...] = e / jnp.sum(e, axis=1, keepdims=True)


# ----------------------------------------------------------------------------
# Wrapper: one-time weight repacking (tiny XLA ops) + single pallas_call.
# ----------------------------------------------------------------------------
def _pack_gate_cols(wf, wb):
    """(K,4H) PyTorch [i,f,g,o] columns -> (K,8H) [i_f i_b | f_f f_b | o_f o_b | g_f g_b]."""
    H = wf.shape[1] // 4
    order = (0, 1, 3, 2)  # i, f, o, g
    cols = []
    for gi in order:
        cols.append(wf[:, gi * H:(gi + 1) * H])
        cols.append(wb[:, gi * H:(gi + 1) * H])
    return jnp.concatenate(cols, axis=1)


def _pack_whh(whf, whb):
    """Block-diagonal recurrent weight for packed state h=[h_f|h_b]: (2H, 8H)."""
    H = whf.shape[0]
    z = jnp.zeros((H, H), jnp.float32)
    order = (0, 1, 3, 2)  # i, f, o, g
    cols = []
    for gi in order:
        cols.append(jnp.concatenate([whf[:, gi * H:(gi + 1) * H], z], axis=0))
        cols.append(jnp.concatenate([z, whb[:, gi * H:(gi + 1) * H]], axis=0))
    return jnp.concatenate(cols, axis=1)


def model_forward(text, params):
    T, B = text.shape
    V, E = params["embedding"].shape
    H = params["w_hh_f_t"].shape[0]
    O = params["w_fc_t"].shape[1]
    G2 = 8 * H
    H2 = 2 * H

    # Gate-type-major packed weights / biases.
    w_ih_packed = _pack_gate_cols(params["w_ih_f_t"], params["w_ih_b_t"])   # (E, 8H)
    b_packed = _pack_gate_cols(params["b_f"], params["b_b"])                # (1, 8H)
    whh_packed = _pack_whh(params["w_hh_f_t"], params["w_hh_b_t"])          # (2H, 8H)

    # Fold embedding into the x-projection; duplicate rows so a 2-hot lookup
    # yields the fwd-lane gates for time t and the bwd-lane gates for T-1-t.
    emb_proj = params["embedding"] @ w_ih_packed                            # (V, 8H)
    col = jnp.arange(G2)
    fwd_lane = (col % H2) < H                                               # (8H,)
    embw = jnp.concatenate(
        [jnp.where(fwd_lane[None, :], emb_proj, 0.0),   # rows 0:V  -> fwd lanes
         jnp.where(fwd_lane[None, :], 0.0, emb_proj)],  # rows V:2V -> bwd lanes
        axis=0)                                                             # (2V, 8H)

    ids_fwd = text.reshape(T * B).astype(jnp.int32)
    ids_bwd = text[::-1, :].reshape(T * B).astype(jnp.int32) + V
    ids2 = jnp.stack([ids_fwd, ids_bwd], axis=1)                            # (T*B, 2)

    return pl.pallas_call(
        _fused_kernel,
        out_shape=jax.ShapeDtypeStruct((T, O), jnp.float32),
        grid_spec=pltpu.PrefetchScalarGridSpec(
            num_scalar_prefetch=0,
            grid=(1,),
            in_specs=[
                pl.BlockSpec((T * B, 2), lambda i: (0, 0)),       # 2-hot token ids
                pl.BlockSpec((2 * V, G2), lambda i: (0, 0)),      # folded emb @ W_ih
                pl.BlockSpec((1, G2), lambda i: (0, 0)),          # folded biases
                pl.BlockSpec((H2, G2), lambda i: (0, 0)),         # block-diag W_hh
                pl.BlockSpec((3 * H2, O), lambda i: (0, 0)),      # fc weight (pre-T)
                pl.BlockSpec((1, O), lambda i: (0, 0)),           # fc bias
            ],
            out_specs=pl.BlockSpec((T, O), lambda i: (0, 0)),
            scratch_shapes=[
                pltpu.VMEM((T, B, G2), jnp.float32),   # merged per-step x-gates
                pltpu.VMEM((T, B, H2), jnp.float32),   # hidden sequence (lstm_out)
            ],
        ),
        compiler_params=pltpu.CompilerParams(dimension_semantics=("arbitrary",)),
    )(ids2, embw, b_packed, whh_packed, params["w_fc_t"], params["b_fc"])


# ----------------------------------------------------------------------------
# Pure-JAX reference (mirrors the PyTorch forward) for a correctness check.
# ----------------------------------------------------------------------------
def _lstm_ref_dir(x, w_ih_t, w_hh_t, b):
    T, B, E = x.shape
    H = w_hh_t.shape[0]

    def step(carry, x_t):
        h, c = carry
        gates = x_t @ w_ih_t + h @ w_hh_t + b[0]
        i, f, g, o = jnp.split(gates, 4, axis=1)
        i, f, o = jax.nn.sigmoid(i), jax.nn.sigmoid(f), jax.nn.sigmoid(o)
        g = jnp.tanh(g)
        c = f * c + i * g
        h = o * jnp.tanh(c)
        return (h, c), h

    init = (jnp.zeros((B, H), jnp.float32), jnp.zeros((B, H), jnp.float32))
    _, hs = lax.scan(step, init, x)
    return hs


def model_ref(text, params):
    emb = jnp.take(params["embedding"], text, axis=0)
    out_f = _lstm_ref_dir(emb, params["w_ih_f_t"], params["w_hh_f_t"], params["b_f"])
    out_b = _lstm_ref_dir(emb[::-1], params["w_ih_b_t"], params["w_hh_b_t"],
                          params["b_b"])[::-1]
    lo = jnp.concatenate([out_f, out_b], axis=-1)
    conc = jnp.concatenate([jnp.mean(lo, 1), jnp.max(lo, 1), lo[:, -1]], axis=1)
    logits = conc @ params["w_fc_t"] + params["b_fc"][0]
    return jax.nn.softmax(logits, axis=1)


# ----------------------------------------------------------------------------
# Deterministic parameter init + demo run.
# ----------------------------------------------------------------------------
def init_params(key, vocab, E, H, O):
    ks = jax.random.split(key, 12)
    u = lambda k, shape, s: jax.random.uniform(k, shape, jnp.float32, -s, s)
    s = 1.0 / jnp.sqrt(H)
    params = {
        "embedding": jax.random.normal(ks[0], (vocab, E), jnp.float32),
        # forward direction (pre-transposed so kernel does x @ W)
        "w_ih_f_t": u(ks[1], (E, 4 * H), s),
        "w_hh_f_t": u(ks[2], (H, 4 * H), s),
        "b_f": u(ks[3], (1, 4 * H), s) + u(ks[4], (1, 4 * H), s),  # b_ih + b_hh
        # backward direction
        "w_ih_b_t": u(ks[5], (E, 4 * H), s),
        "w_hh_b_t": u(ks[6], (H, 4 * H), s),
        "b_b": u(ks[7], (1, 4 * H), s) + u(ks[8], (1, 4 * H), s),
        # fc: Linear(3 * 2H, O), pre-transposed to (3*2H, O)
        "w_fc_t": u(ks[9], (3 * 2 * H, O), 1.0 / jnp.sqrt(3 * 2 * H)),
        "b_fc": u(ks[10], (1, O), 1.0 / jnp.sqrt(3 * 2 * H)),
    }
    return params, ks[11]


if __name__ == "__main__":
    VOCAB, E, H, O = 50, 32, 32, 4        # input_dim, embedding_dim, hidden_dim, output_dim
    T, B = 8, 8                           # time-major text (T, B); B=8 fills the 8 sublanes

    key = jax.random.PRNGKey(0)
    params, key = init_params(key, VOCAB, E, H, O)
    text = jax.random.randint(key, (T, B), 0, VOCAB, dtype=jnp.int32)

    out = jax.block_until_ready(model_forward(text, params))
    ref = jax.block_until_ready(model_ref(text, params))

    assert out.shape == (T, O), out.shape
    assert jnp.allclose(jnp.sum(out, axis=1), 1.0, atol=1e-5)
    assert jnp.allclose(out, ref, rtol=2e-3, atol=2e-3), "mismatch vs reference"
    print("KERNEL_OK")
</pallas_src>

<mosaic_0001>
module attributes {stable_mosaic.version = 11 : i64} {
  func.func @_fused_kernel(%arg0: i32, %arg1: memref<64x2xi32, #tpu.memory_space<vmem>>, %arg2: memref<100x256xf32, #tpu.memory_space<vmem>>, %arg3: memref<1x256xf32, #tpu.memory_space<vmem>>, %arg4: memref<64x256xf32, #tpu.memory_space<vmem>>, %arg5: memref<192x4xf32, #tpu.memory_space<vmem>>, %arg6: memref<1x4xf32, #tpu.memory_space<vmem>>, %arg7: memref<8x4xf32, #tpu.memory_space<vmem>>, %arg8: memref<8x8x256xf32, #tpu.memory_space<vmem>>, %arg9: memref<8x8x64xf32, #tpu.memory_space<vmem>>) attributes {dimension_semantics = [#tpu.dimension_semantics<arbitrary>], iteration_bounds = array<i64: 1>, scalar_prefetch = 0 : i64, scratch_operands = 2 : i64, tpu.core_type = #tpu.core_type<tc>, window_params = [{pipeline_mode = #tpu.pipeline_mode<synchronous>, transform_indices = @transform_0, window_bounds = array<i64: 64, 2>}, {pipeline_mode = #tpu.pipeline_mode<synchronous>, transform_indices = @transform_1, window_bounds = array<i64: 100, 256>}, {pipeline_mode = #tpu.pipeline_mode<synchronous>, transform_indices = @transform_2, window_bounds = array<i64: 1, 256>}, {pipeline_mode = #tpu.pipeline_mode<synchronous>, transform_indices = @transform_3, window_bounds = array<i64: 64, 256>}, {pipeline_mode = #tpu.pipeline_mode<synchronous>, transform_indices = @transform_4, window_bounds = array<i64: 192, 4>}, {pipeline_mode = #tpu.pipeline_mode<synchronous>, transform_indices = @transform_5, window_bounds = array<i64: 1, 4>}, {pipeline_mode = #tpu.pipeline_mode<synchronous>, transform_indices = @transform_6, window_bounds = array<i64: 8, 4>}]} {
    %c0 = arith.constant 0 : index
    %c0_0 = arith.constant 0 : index
    %0 = vector.load %arg1[%c0, %c0_0] : memref<64x2xi32, #tpu.memory_space<vmem>>, vector<64x1xi32>
    %c0_1 = arith.constant 0 : index
    %c1 = arith.constant 1 : index
    %1 = vector.load %arg1[%c0_1, %c1] : memref<64x2xi32, #tpu.memory_space<vmem>>, vector<64x1xi32>
    %2 = tpu.iota {dimensions = array<i32: 1>} : vector<64x100xi32>
    %3 = vector.broadcast %0 : vector<64x1xi32> to vector<64x100xi32>
    %4 = arith.cmpi eq, %2, %3 : vector<64x100xi32>
    %5 = vector.broadcast %1 : vector<64x1xi32> to vector<64x100xi32>
    %6 = arith.cmpi eq, %2, %5 : vector<64x100xi32>
    %7 = arith.ori %4, %6 : vector<64x100xi1>
    %8 = arith.extui %7 : vector<64x100xi1> to vector<64x100xi32>
    %9 = arith.sitofp %8 : vector<64x100xi32> to vector<64x100xf32>
    %c0_2 = arith.constant 0 : index
    %c0_3 = arith.constant 0 : index
    %10 = vector.load %arg2[%c0_2, %c0_3] : memref<100x256xf32, #tpu.memory_space<vmem>>, vector<100x256xf32>
    %cst = arith.constant dense<0.000000e+00> : vector<64x256xf32>
    %11 = tpu.matmul %9, %10, %cst {dimension_numbers = #tpu.dot_dimension_numbers<[1], [0], [0], [1], [0, 0, 1, 1], [], []>} : vector<64x100xf32>, vector<100x256xf32>, vector<64x256xf32> -> vector<64x256xf32>
    %c0_4 = arith.constant 0 : index
    %c0_5 = arith.constant 0 : index
    %12 = vector.load %arg3[%c0_4, %c0_5] : memref<1x256xf32, #tpu.memory_space<vmem>>, vector<1x256xf32>
    %13 = vector.broadcast %12 : vector<1x256xf32> to vector<64x256xf32>
    %14 = arith.addf %11, %13 : vector<64x256xf32>
    %15 = vector.shape_cast %14 : vector<64x256xf32> to vector<8x8x256xf32>
    %c0_6 = arith.constant 0 : index
    %c0_7 = arith.constant 0 : index
    %c0_8 = arith.constant 0 : index
    %16 = vector.load %arg8[%c0_6, %c0_7, %c0_8] : memref<8x8x256xf32, #tpu.memory_space<vmem>>, vector<8x8x256xf32>
    tpu.vector_store %arg8[%c0_6, %c0_7, %c0_8], %15 {strides = array<i32>} : memref<8x8x256xf32, #tpu.memory_space<vmem>>, vector<8x8x256xf32>,
    %c0_9 = arith.constant 0 : index
    %c0_10 = arith.constant 0 : index
    %17 = vector.load %arg4[%c0_9, %c0_10] : memref<64x256xf32, #tpu.memory_space<vmem>>, vector<64x256xf32>
    %cst_11 = arith.constant 0.000000e+00 : f32
    %18 = vector.broadcast %cst_11 : f32 to vector<8x64xf32>
    %c0_i32 = arith.constant 0 : i32
    %19 = arith.index_cast %c0_i32 : i32 to index
    %c0_12 = arith.constant 0 : index
    %c0_13 = arith.constant 0 : index
    %20 = vector.load %arg8[%19, %c0_12, %c0_13] : memref<8x8x256xf32, #tpu.memory_space<vmem>>, vector<1x8x256xf32>
    %21 = vector.shape_cast %20 : vector<1x8x256xf32> to vector<8x256xf32>
    %cst_14 = arith.constant dense<0.000000e+00> : vector<8x256xf32>
    %22 = tpu.matmul %18, %17, %cst_14 {dimension_numbers = #tpu.dot_dimension_numbers<[1], [0], [0], [1], [0, 0, 1, 1], [], []>} : vector<8x64xf32>, vector<64x256xf32>, vector<8x256xf32> -> vector<8x256xf32>
    %23 = arith.addf %21, %22 : vector<8x256xf32>
    %24 = vector.extract_strided_slice %23 {offsets = [0, 0], sizes = [8, 192], strides = [1, 1]} : vector<8x256xf32> to vector<8x192xf32>
    %25 = arith.negf %24 : vector<8x192xf32>
    %26 = math.exp %25 : vector<8x192xf32>
    %cst_15 = arith.constant 1.000000e+00 : f32
    %27 = vector.broadcast %cst_15 : f32 to vector<8x192xf32>
    %28 = arith.addf %27, %26 : vector<8x192xf32>
    %29 = arith.divf %27, %28 : vector<8x192xf32>
    %30 = vector.extract_strided_slice %23 {offsets = [0, 192], sizes = [8, 64], strides = [1, 1]} : vector<8x256xf32> to vector<8x64xf32>
    %31 = math.tanh %30 : vector<8x64xf32>
    %32 = vector.extract_strided_slice %29 {offsets = [0, 0], sizes = [8, 64], strides = [1, 1]} : vector<8x192xf32> to vector<8x64xf32>
    %33 = vector.extract_strided_slice %29 {offsets = [0, 64], sizes = [8, 64], strides = [1, 1]} : vector<8x192xf32> to vector<8x64xf32>
    %34 = vector.extract_strided_slice %29 {offsets = [0, 128], sizes = [8, 64], strides = [1, 1]} : vector<8x192xf32> to vector<8x64xf32>
    %35 = arith.mulf %33, %18 : vector<8x64xf32>
    %36 = arith.mulf %32, %31 : vector<8x64xf32>
    %37 = arith.addf %35, %36 : vector<8x64xf32>
    %38 = math.tanh %37 : vector<8x64xf32>
    %39 = arith.mulf %34, %38 : vector<8x64xf32>
    %40 = vector.extract_strided_slice %39 {offsets = [0, 0], sizes = [8, 32], strides = [1, 1]} : vector<8x64xf32> to vector<8x32xf32>
    %41 = arith.index_cast %c0_i32 : i32 to index
    %c0_16 = arith.constant 0 : index
    %c0_17 = arith.constant 0 : index
    %42 = vector.load %arg9[%41, %c0_16, %c0_17] : memref<8x8x64xf32, #tpu.memory_space<vmem>>, vector<1x8x32xf32>
    %43 = vector.shape_cast %42 : vector<1x8x32xf32> to vector<8x32xf32>
    %44 = vector.shape_cast %40 : vector<8x32xf32> to vector<1x8x32xf32>
    tpu.vector_store %arg9[%41, %c0_16, %c0_17], %44 {strides = array<i32>} : memref<8x8x64xf32, #tpu.memory_space<vmem>>, vector<1x8x32xf32>,
    %45 = vector.extract_strided_slice %39 {offsets = [0, 32], sizes = [8, 32], strides = [1, 1]} : vector<8x64xf32> to vector<8x32xf32>
    %c7_i32 = arith.constant 7 : i32
    %46 = arith.subi %c7_i32, %c0_i32 : i32
    %47 = arith.index_cast %46 : i32 to index
    %c0_18 = arith.constant 0 : index
    %c32 = arith.constant 32 : index
    %48 = vector.load %arg9[%47, %c0_18, %c32] : memref<8x8x64xf32, #tpu.memory_space<vmem>>, vector<1x8x32xf32>
    %49 = vector.shape_cast %48 : vector<1x8x32xf32> to vector<8x32xf32>
    %50 = vector.shape_cast %45 : vector<8x32xf32> to vector<1x8x32xf32>
    tpu.vector_store %arg9[%47, %c0_18, %c32], %50 {strides = array<i32>} : memref<8x8x64xf32, #tpu.memory_space<vmem>>, vector<1x8x32xf32>,
    %c1_i32 = arith.constant 1 : i32
    %51 = arith.index_cast %c1_i32 : i32 to index
    %c0_19 = arith.constant 0 : index
    %c0_20 = arith.constant 0 : index
    %52 = vector.load %arg8[%51, %c0_19, %c0_20] : memref<8x8x256xf32, #tpu.memory_space<vmem>>, vector<1x8x256xf32>
    %53 = vector.shape_cast %52 : vector<1x8x256xf32> to vector<8x256xf32>
    %cst_21 = arith.constant dense<0.000000e+00> : vector<8x256xf32>
    %54 = tpu.matmul %39, %17, %cst_21 {dimension_numbers = #tpu.dot_dimension_numbers<[1], [0], [0], [1], [0, 0, 1, 1], [], []>} : vector<8x64xf32>, vector<64x256xf32>, vector<8x256xf32> -> vector<8x256xf32>
    %55 = arith.addf %53, %54 : vector<8x256xf32>
    %56 = vector.extract_strided_slice %55 {offsets = [0, 0], sizes = [8, 192], strides = [1, 1]} : vector<8x256xf32> to vector<8x192xf32>
    %57 = arith.negf %56 : vector<8x192xf32>
    %58 = math.exp %57 : vector<8x192xf32>
    %cst_22 = arith.constant 1.000000e+00 : f32
    %59 = vector.broadcast %cst_22 : f32 to vector<8x192xf32>
    %60 = arith.addf %59, %58 : vector<8x192xf32>
    %61 = arith.divf %59, %60 : vector<8x192xf32>
    %62 = vector.extract_strided_slice %55 {offsets = [0, 192], sizes = [8, 64], strides = [1, 1]} : vector<8x256xf32> to vector<8x64xf32>
    %63 = math.tanh %62 : vector<8x64xf32>
    %64 = vector.extract_strided_slice %61 {offsets = [0, 0], sizes = [8, 64], strides = [1, 1]} : vector<8x192xf32> to vector<8x64xf32>
    %65 = vector.extract_strided_slice %61 {offsets = [0, 64], sizes = [8, 64], strides = [1, 1]} : vector<8x192xf32> to vector<8x64xf32>
    %66 = vector.extract_strided_slice %61 {offsets = [0, 128], sizes = [8, 64], strides = [1, 1]} : vector<8x192xf32> to vector<8x64xf32>
    %67 = arith.mulf %65, %37 : vector<8x64xf32>
    %68 = arith.mulf %64, %63 : vector<8x64xf32>
    %69 = arith.addf %67, %68 : vector<8x64xf32>
    %70 = math.tanh %69 : vector<8x64xf32>
    %71 = arith.mulf %66, %70 : vector<8x64xf32>
    %72 = vector.extract_strided_slice %71 {offsets = [0, 0], sizes = [8, 32], strides = [1, 1]} : vector<8x64xf32> to vector<8x32xf32>
    %73 = arith.index_cast %c1_i32 : i32 to index
    %c0_23 = arith.constant 0 : index
    %c0_24 = arith.constant 0 : index
    %74 = vector.load %arg9[%73, %c0_23, %c0_24] : memref<8x8x64xf32, #tpu.memory_space<vmem>>, vector<1x8x32xf32>
    %75 = vector.shape_cast %74 : vector<1x8x32xf32> to vector<8x32xf32>
    %76 = vector.shape_cast %72 : vector<8x32xf32> to vector<1x8x32xf32>
    tpu.vector_store %arg9[%73, %c0_23, %c0_24], %76 {strides = array<i32>} : memref<8x8x64xf32, #tpu.memory_space<vmem>>, vector<1x8x32xf32>,
    %77 = vector.extract_strided_slice %71 {offsets = [0, 32], sizes = [8, 32], strides = [1, 1]} : vector<8x64xf32> to vector<8x32xf32>
    %c7_i32_25 = arith.constant 7 : i32
    %78 = arith.subi %c7_i32_25, %c1_i32 : i32
    %79 = arith.index_cast %78 : i32 to index
    %c0_26 = arith.constant 0 : index
    %c32_27 = arith.constant 32 : index
    %80 = vector.load %arg9[%79, %c0_26, %c32_27] : memref<8x8x64xf32, #tpu.memory_space<vmem>>, vector<1x8x32xf32>
    %81 = vector.shape_cast %80 : vector<1x8x32xf32> to vector<8x32xf32>
    %82 = vector.shape_cast %77 : vector<8x32xf32> to vector<1x8x32xf32>
    tpu.vector_store %arg9[%79, %c0_26, %c32_27], %82 {strides = array<i32>} : memref<8x8x64xf32, #tpu.memory_space<vmem>>, vector<1x8x32xf32>,
    %c2_i32 = arith.constant 2 : i32
    %83 = arith.index_cast %c2_i32 : i32 to index
    %c0_28 = arith.constant 0 : index
    %c0_29 = arith.constant 0 : index
    %84 = vector.load %arg8[%83, %c0_28, %c0_29] : memref<8x8x256xf32, #tpu.memory_space<vmem>>, vector<1x8x256xf32>
    %85 = vector.shape_cast %84 : vector<1x8x256xf32> to vector<8x256xf32>
    %cst_30 = arith.constant dense<0.000000e+00> : vector<8x256xf32>
    %86 = tpu.matmul %71, %17, %cst_30 {dimension_numbers = #tpu.dot_dimension_numbers<[1], [0], [0], [1], [0, 0, 1, 1], [], []>} : vector<8x64xf32>, vector<64x256xf32>, vector<8x256xf32> -> vector<8x256xf32>
    %87 = arith.addf %85, %86 : vector<8x256xf32>
    %88 = vector.extract_strided_slice %87 {offsets = [0, 0], sizes = [8, 192], strides = [1, 1]} : vector<8x256xf32> to vector<8x192xf32>
    %89 = arith.negf %88 : vector<8x192xf32>
    %90 = math.exp %89 : vector<8x192xf32>
    %cst_31 = arith.constant 1.000000e+00 : f32
    %91 = vector.broadcast %cst_31 : f32 to vector<8x192xf32>
    %92 = arith.addf %91, %90 : vector<8x192xf32>
    %93 = arith.divf %91, %92 : vector<8x192xf32>
    %94 = vector.extract_strided_slice %87 {offsets = [0, 192], sizes = [8, 64], strides = [1, 1]} : vector<8x256xf32> to vector<8x64xf32>
    %95 = math.tanh %94 : vector<8x64xf32>
    %96 = vector.extract_strided_slice %93 {offsets = [0, 0], sizes = [8, 64], strides = [1, 1]} : vector<8x192xf32> to vector<8x64xf32>
    %97 = vector.extract_strided_slice %93 {offsets = [0, 64], sizes = [8, 64], strides = [1, 1]} : vector<8x192xf32> to vector<8x64xf32>
    %98 = vector.extract_strided_slice %93 {offsets = [0, 128], sizes = [8, 64], strides = [1, 1]} : vector<8x192xf32> to vector<8x64xf32>
    %99 = arith.mulf %97, %69 : vector<8x64xf32>
    %100 = arith.mulf %96, %95 : vector<8x64xf32>
    %101 = arith.addf %99, %100 : vector<8x64xf32>
    %102 = math.tanh %101 : vector<8x64xf32>
    %103 = arith.mulf %98, %102 : vector<8x64xf32>
    %104 = vector.extract_strided_slice %103 {offsets = [0, 0], sizes = [8, 32], strides = [1, 1]} : vector<8x64xf32> to vector<8x32xf32>
    %105 = arith.index_cast %c2_i32 : i32 to index
    %c0_32 = arith.constant 0 : index
    %c0_33 = arith.constant 0 : index
    %106 = vector.load %arg9[%105, %c0_32, %c0_33] : memref<8x8x64xf32, #tpu.memory_space<vmem>>, vector<1x8x32xf32>
    %107 = vector.shape_cast %106 : vector<1x8x32xf32> to vector<8x32xf32>
    %108 = vector.shape_cast %104 : vector<8x32xf32> to vector<1x8x32xf32>
    tpu.vector_store %arg9[%105, %c0_32, %c0_33], %108 {strides = array<i32>} : memref<8x8x64xf32, #tpu.memory_space<vmem>>, vector<1x8x32xf32>,
    %109 = vector.extract_strided_slice %103 {offsets = [0, 32], sizes = [8, 32], strides = [1, 1]} : vector<8x64xf32> to vector<8x32xf32>
    %c7_i32_34 = arith.constant 7 : i32
    %110 = arith.subi %c7_i32_34, %c2_i32 : i32
    %111 = arith.index_cast %110 : i32 to index
    %c0_35 = arith.constant 0 : index
    %c32_36 = arith.constant 32 : index
    %112 = vector.load %arg9[%111, %c0_35, %c32_36] : memref<8x8x64xf32, #tpu.memory_space<vmem>>, vector<1x8x32xf32>
    %113 = vector.shape_cast %112 : vector<1x8x32xf32> to vector<8x32xf32>
    %114 = vector.shape_cast %109 : vector<8x32xf32> to vector<1x8x32xf32>
    tpu.vector_store %arg9[%111, %c0_35, %c32_36], %114 {strides = array<i32>} : memref<8x8x64xf32, #tpu.memory_space<vmem>>, vector<1x8x32xf32>,
    %c3_i32 = arith.constant 3 : i32
    %115 = arith.index_cast %c3_i32 : i32 to index
    %c0_37 = arith.constant 0 : index
    %c0_38 = arith.constant 0 : index
    %116 = vector.load %arg8[%115, %c0_37, %c0_38] : memref<8x8x256xf32, #tpu.memory_space<vmem>>, vector<1x8x256xf32>
    %117 = vector.shape_cast %116 : vector<1x8x256xf32> to vector<8x256xf32>
    %cst_39 = arith.constant dense<0.000000e+00> : vector<8x256xf32>
    %118 = tpu.matmul %103, %17, %cst_39 {dimension_numbers = #tpu.dot_dimension_numbers<[1], [0], [0], [1], [0, 0, 1, 1], [], []>} : vector<8x64xf32>, vector<64x256xf32>, vector<8x256xf32> -> vector<8x256xf32>
    %119 = arith.addf %117, %118 : vector<8x256xf32>
    %120 = vector.extract_strided_slice %119 {offsets = [0, 0], sizes = [8, 192], strides = [1, 1]} : vector<8x256xf32> to vector<8x192xf32>
    %121 = arith.negf %120 : vector<8x192xf32>
    %122 = math.exp %121 : vector<8x192xf32>
    %cst_40 = arith.constant 1.000000e+00 : f32
    %123 = vector.broadcast %cst_40 : f32 to vector<8x192xf32>
    %124 = arith.addf %123, %122 : vector<8x192xf32>
    %125 = arith.divf %123, %124 : vector<8x192xf32>
    %126 = vector.extract_strided_slice %119 {offsets = [0, 192], sizes = [8, 64], strides = [1, 1]} : vector<8x256xf32> to vector<8x64xf32>
    %127 = math.tanh %126 : vector<8x64xf32>
    %128 = vector.extract_strided_slice %125 {offsets = [0, 0], sizes = [8, 64], strides = [1, 1]} : vector<8x192xf32> to vector<8x64xf32>
    %129 = vector.extract_strided_slice %125 {offsets = [0, 64], sizes = [8, 64], strides = [1, 1]} : vector<8x192xf32> to vector<8x64xf32>
    %130 = vector.extract_strided_slice %125 {offsets = [0, 128], sizes = [8, 64], strides = [1, 1]} : vector<8x192xf32> to vector<8x64xf32>
    %131 = arith.mulf %129, %101 : vector<8x64xf32>
    %132 = arith.mulf %128, %127 : vector<8x64xf32>
    %133 = arith.addf %131, %132 : vector<8x64xf32>
    %134 = math.tanh %133 : vector<8x64xf32>
    %135 = arith.mulf %130, %134 : vector<8x64xf32>
    %136 = vector.extract_strided_slice %135 {offsets = [0, 0], sizes = [8, 32], strides = [1, 1]} : vector<8x64xf32> to vector<8x32xf32>
    %137 = arith.index_cast %c3_i32 : i32 to index
    %c0_41 = arith.constant 0 : index
    %c0_42 = arith.constant 0 : index
    %138 = vector.load %arg9[%137, %c0_41, %c0_42] : memref<8x8x64xf32, #tpu.memory_space<vmem>>, vector<1x8x32xf32>
    %139 = vector.shape_cast %138 : vector<1x8x32xf32> to vector<8x32xf32>
    %140 = vector.shape_cast %136 : vector<8x32xf32> to vector<1x8x32xf32>
    tpu.vector_store %arg9[%137, %c0_41, %c0_42], %140 {strides = array<i32>} : memref<8x8x64xf32, #tpu.memory_space<vmem>>, vector<1x8x32xf32>,
    %141 = vector.extract_strided_slice %135 {offsets = [0, 32], sizes = [8, 32], strides = [1, 1]} : vector<8x64xf32> to vector<8x32xf32>
    %c7_i32_43 = arith.constant 7 : i32
    %142 = arith.subi %c7_i32_43, %c3_i32 : i32
    %143 = arith.index_cast %142 : i32 to index
    %c0_44 = arith.constant 0 : index
    %c32_45 = arith.constant 32 : index
    %144 = vector.load %arg9[%143, %c0_44, %c32_45] : memref<8x8x64xf32, #tpu.memory_space<vmem>>, vector<1x8x32xf32>
    %145 = vector.shape_cast %144 : vector<1x8x32xf32> to vector<8x32xf32>
    %146 = vector.shape_cast %141 : vector<8x32xf32> to vector<1x8x32xf32>
    tpu.vector_store %arg9[%143, %c0_44, %c32_45], %146 {strides = array<i32>} : memref<8x8x64xf32, #tpu.memory_space<vmem>>, vector<1x8x32xf32>,
    %c4_i32 = arith.constant 4 : i32
    %147 = arith.index_cast %c4_i32 : i32 to index
    %c0_46 = arith.constant 0 : index
    %c0_47 = arith.constant 0 : index
    %148 = vector.load %arg8[%147, %c0_46, %c0_47] : memref<8x8x256xf32, #tpu.memory_space<vmem>>, vector<1x8x256xf32>
    %149 = vector.shape_cast %148 : vector<1x8x256xf32> to vector<8x256xf32>
    %cst_48 = arith.constant dense<0.000000e+00> : vector<8x256xf32>
    %150 = tpu.matmul %135, %17, %cst_48 {dimension_numbers = #tpu.dot_dimension_numbers<[1], [0], [0], [1], [0, 0, 1, 1], [], []>} : vector<8x64xf32>, vector<64x256xf32>, vector<8x256xf32> -> vector<8x256xf32>
    %151 = arith.addf %149, %150 : vector<8x256xf32>
    %152 = vector.extract_strided_slice %151 {offsets = [0, 0], sizes = [8, 192], strides = [1, 1]} : vector<8x256xf32> to vector<8x192xf32>
    %153 = arith.negf %152 : vector<8x192xf32>
    %154 = math.exp %153 : vector<8x192xf32>
    %cst_49 = arith.constant 1.000000e+00 : f32
    %155 = vector.broadcast %cst_49 : f32 to vector<8x192xf32>
    %156 = arith.addf %155, %154 : vector<8x192xf32>
    %157 = arith.divf %155, %156 : vector<8x192xf32>
    %158 = vector.extract_strided_slice %151 {offsets = [0, 192], sizes = [8, 64], strides = [1, 1]} : vector<8x256xf32> to vector<8x64xf32>
    %159 = math.tanh %158 : vector<8x64xf32>
    %160 = vector.extract_strided_slice %157 {offsets = [0, 0], sizes = [8, 64], strides = [1, 1]} : vector<8x192xf32> to vector<8x64xf32>
    %161 = vector.extract_strided_slice %157 {offsets = [0, 64], sizes = [8, 64], strides = [1, 1]} : vector<8x192xf32> to vector<8x64xf32>
    %162 = vector.extract_strided_slice %157 {offsets = [0, 128], sizes = [8, 64], strides = [1, 1]} : vector<8x192xf32> to vector<8x64xf32>
    %163 = arith.mulf %161, %133 : vector<8x64xf32>
    %164 = arith.mulf %160, %159 : vector<8x64xf32>
    %165 = arith.addf %163, %164 : vector<8x64xf32>
    %166 = math.tanh %165 : vector<8x64xf32>
    %167 = arith.mulf %162, %166 : vector<8x64xf32>
    %168 = vector.extract_strided_slice %167 {offsets = [0, 0], sizes = [8, 32], strides = [1, 1]} : vector<8x64xf32> to vector<8x32xf32>
    %169 = arith.index_cast %c4_i32 : i32 to index
    %c0_50 = arith.constant 0 : index
    %c0_51 = arith.constant 0 : index
    %170 = vector.load %arg9[%169, %c0_50, %c0_51] : memref<8x8x64xf32, #tpu.memory_space<vmem>>, vector<1x8x32xf32>
    %171 = vector.shape_cast %170 : vector<1x8x32xf32> to vector<8x32xf32>
    %172 = vector.shape_cast %168 : vector<8x32xf32> to vector<1x8x32xf32>
    tpu.vector_store %arg9[%169, %c0_50, %c0_51], %172 {strides = array<i32>} : memref<8x8x64xf32, #tpu.memory_space<vmem>>, vector<1x8x32xf32>,
    %173 = vector.extract_strided_slice %167 {offsets = [0, 32], sizes = [8, 32], strides = [1, 1]} : vector<8x64xf32> to vector<8x32xf32>
    %c7_i32_52 = arith.constant 7 : i32
    %174 = arith.subi %c7_i32_52, %c4_i32 : i32
    %175 = arith.index_cast %174 : i32 to index
    %c0_53 = arith.constant 0 : index
    %c32_54 = arith.constant 32 : index
    %176 = vector.load %arg9[%175, %c0_53, %c32_54] : memref<8x8x64xf32, #tpu.memory_space<vmem>>, vector<1x8x32xf32>
    %177 = vector.shape_cast %176 : vector<1x8x32xf32> to vector<8x32xf32>
    %178 = vector.shape_cast %173 : vector<8x32xf32> to vector<1x8x32xf32>
    tpu.vector_store %arg9[%175, %c0_53, %c32_54], %178 {strides = array<i32>} : memref<8x8x64xf32, #tpu.memory_space<vmem>>, vector<1x8x32xf32>,
    %c5_i32 = arith.constant 5 : i32
    %179 = arith.index_cast %c5_i32 : i32 to index
    %c0_55 = arith.constant 0 : index
    %c0_56 = arith.constant 0 : index
    %180 = vector.load %arg8[%179, %c0_55, %c0_56] : memref<8x8x256xf32, #tpu.memory_space<vmem>>, vector<1x8x256xf32>
    %181 = vector.shape_cast %180 : vector<1x8x256xf32> to vector<8x256xf32>
    %cst_57 = arith.constant dense<0.000000e+00> : vector<8x256xf32>
    %182 = tpu.matmul %167, %17, %cst_57 {dimension_numbers = #tpu.dot_dimension_numbers<[1], [0], [0], [1], [0, 0, 1, 1], [], []>} : vector<8x64xf32>, vector<64x256xf32>, vector<8x256xf32> -> vector<8x256xf32>
    %183 = arith.addf %181, %182 : vector<8x256xf32>
    %184 = vector.extract_strided_slice %183 {offsets = [0, 0], sizes = [8, 192], strides = [1, 1]} : vector<8x256xf32> to vector<8x192xf32>
    %185 = arith.negf %184 : vector<8x192xf32>
    %186 = math.exp %185 : vector<8x192xf32>
    %cst_58 = arith.constant 1.000000e+00 : f32
    %187 = vector.broadcast %cst_58 : f32 to vector<8x192xf32>
    %188 = arith.addf %187, %186 : vector<8x192xf32>
    %189 = arith.divf %187, %188 : vector<8x192xf32>
    %190 = vector.extract_strided_slice %183 {offsets = [0, 192], sizes = [8, 64], strides = [1, 1]} : vector<8x256xf32> to vector<8x64xf32>
    %191 = math.tanh %190 : vector<8x64xf32>
    %192 = vector.extract_strided_slice %189 {offsets = [0, 0], sizes = [8, 64], strides = [1, 1]} : vector<8x192xf32> to vector<8x64xf32>
    %193 = vector.extract_strided_slice %189 {offsets = [0, 64], sizes = [8, 64], strides = [1, 1]} : vector<8x192xf32> to vector<8x64xf32>
    %194 = vector.extract_strided_slice %189 {offsets = [0, 128], sizes = [8, 64], strides = [1, 1]} : vector<8x192xf32> to vector<8x64xf32>
    %195 = arith.mulf %193, %165 : vector<8x64xf32>
    %196 = arith.mulf %192, %191 : vector<8x64xf32>
    %197 = arith.addf %195, %196 : vector<8x64xf32>
    %198 = math.tanh %197 : vector<8x64xf32>
    %199 = arith.mulf %194, %198 : vector<8x64xf32>
    %200 = vector.extract_strided_slice %199 {offsets = [0, 0], sizes = [8, 32], strides = [1, 1]} : vector<8x64xf32> to vector<8x32xf32>
    %201 = arith.index_cast %c5_i32 : i32 to index
    %c0_59 = arith.constant 0 : index
    %c0_60 = arith.constant 0 : index
    %202 = vector.load %arg9[%201, %c0_59, %c0_60] : memref<8x8x64xf32, #tpu.memory_space<vmem>>, vector<1x8x32xf32>
    %203 = vector.shape_cast %202 : vector<1x8x32xf32> to vector<8x32xf32>
    %204 = vector.shape_cast %200 : vector<8x32xf32> to vector<1x8x32xf32>
    tpu.vector_store %arg9[%201, %c0_59, %c0_60], %204 {strides = array<i32>} : memref<8x8x64xf32, #tpu.memory_space<vmem>>, vector<1x8x32xf32>,
    %205 = vector.extract_strided_slice %199 {offsets = [0, 32], sizes = [8, 32], strides = [1, 1]} : vector<8x64xf32> to vector<8x32xf32>
    %c7_i32_61 = arith.constant 7 : i32
    %206 = arith.subi %c7_i32_61, %c5_i32 : i32
    %207 = arith.index_cast %206 : i32 to index
    %c0_62 = arith.constant 0 : index
    %c32_63 = arith.constant 32 : index
    %208 = vector.load %arg9[%207, %c0_62, %c32_63] : memref<8x8x64xf32, #tpu.memory_space<vmem>>, vector<1x8x32xf32>
    %209 = vector.shape_cast %208 : vector<1x8x32xf32> to vector<8x32xf32>
    %210 = vector.shape_cast %205 : vector<8x32xf32> to vector<1x8x32xf32>
    tpu.vector_store %arg9[%207, %c0_62, %c32_63], %210 {strides = array<i32>} : memref<8x8x64xf32, #tpu.memory_space<vmem>>, vector<1x8x32xf32>,
    %c6_i32 = arith.constant 6 : i32
    %211 = arith.index_cast %c6_i32 : i32 to index
    %c0_64 = arith.constant 0 : index
    %c0_65 = arith.constant 0 : index
    %212 = vector.load %arg8[%211, %c0_64, %c0_65] : memref<8x8x256xf32, #tpu.memory_space<vmem>>, vector<1x8x256xf32>
    %213 = vector.shape_cast %212 : vector<1x8x256xf32> to vector<8x256xf32>
    %cst_66 = arith.constant dense<0.000000e+00> : vector<8x256xf32>
    %214 = tpu.matmul %199, %17, %cst_66 {dimension_numbers = #tpu.dot_dimension_numbers<[1], [0], [0], [1], [0, 0, 1, 1], [], []>} : vector<8x64xf32>, vector<64x256xf32>, vector<8x256xf32> -> vector<8x256xf32>
    %215 = arith.addf %213, %214 : vector<8x256xf32>
    %216 = vector.extract_strided_slice %215 {offsets = [0, 0], sizes = [8, 192], strides = [1, 1]} : vector<8x256xf32> to vector<8x192xf32>
    %217 = arith.negf %216 : vector<8x192xf32>
    %218 = math.exp %217 : vector<8x192xf32>
    %cst_67 = arith.constant 1.000000e+00 : f32
    %219 = vector.broadcast %cst_67 : f32 to vector<8x192xf32>
    %220 = arith.addf %219, %218 : vector<8x192xf32>
    %221 = arith.divf %219, %220 : vector<8x192xf32>
    %222 = vector.extract_strided_slice %215 {offsets = [0, 192], sizes = [8, 64], strides = [1, 1]} : vector<8x256xf32> to vector<8x64xf32>
    %223 = math.tanh %222 : vector<8x64xf32>
    %224 = vector.extract_strided_slice %221 {offsets = [0, 0], sizes = [8, 64], strides = [1, 1]} : vector<8x192xf32> to vector<8x64xf32>
    %225 = vector.extract_strided_slice %221 {offsets = [0, 64], sizes = [8, 64], strides = [1, 1]} : vector<8x192xf32> to vector<8x64xf32>
    %226 = vector.extract_strided_slice %221 {offsets = [0, 128], sizes = [8, 64], strides = [1, 1]} : vector<8x192xf32> to vector<8x64xf32>
    %227 = arith.mulf %225, %197 : vector<8x64xf32>
    %228 = arith.mulf %224, %223 : vector<8x64xf32>
    %229 = arith.addf %227, %228 : vector<8x64xf32>
    %230 = math.tanh %229 : vector<8x64xf32>
    %231 = arith.mulf %226, %230 : vector<8x64xf32>
    %232 = vector.extract_strided_slice %231 {offsets = [0, 0], sizes = [8, 32], strides = [1, 1]} : vector<8x64xf32> to vector<8x32xf32>
    %233 = arith.index_cast %c6_i32 : i32 to index
    %c0_68 = arith.constant 0 : index
    %c0_69 = arith.constant 0 : index
    %234 = vector.load %arg9[%233, %c0_68, %c0_69] : memref<8x8x64xf32, #tpu.memory_space<vmem>>, vector<1x8x32xf32>
    %235 = vector.shape_cast %234 : vector<1x8x32xf32> to vector<8x32xf32>
    %236 = vector.shape_cast %232 : vector<8x32xf32> to vector<1x8x32xf32>
    tpu.vector_store %arg9[%233, %c0_68, %c0_69], %236 {strides = array<i32>} : memref<8x8x64xf32, #tpu.memory_space<vmem>>, vector<1x8x32xf32>,
    %237 = vector.extract_strided_slice %231 {offsets = [0, 32], sizes = [8, 32], strides = [1, 1]} : vector<8x64xf32> to vector<8x32xf32>
    %c7_i32_70 = arith.constant 7 : i32
    %238 = arith.subi %c7_i32_70, %c6_i32 : i32
    %239 = arith.index_cast %238 : i32 to index
    %c0_71 = arith.constant 0 : index
    %c32_72 = arith.constant 32 : index
    %240 = vector.load %arg9[%239, %c0_71, %c32_72] : memref<8x8x64xf32, #tpu.memory_space<vmem>>, vector<1x8x32xf32>
    %241 = vector.shape_cast %240 : vector<1x8x32xf32> to vector<8x32xf32>
    %242 = vector.shape_cast %237 : vector<8x32xf32> to vector<1x8x32xf32>
    tpu.vector_store %arg9[%239, %c0_71, %c32_72], %242 {strides = array<i32>} : memref<8x8x64xf32, #tpu.memory_space<vmem>>, vector<1x8x32xf32>,
    %c7_i32_73 = arith.constant 7 : i32
    %243 = arith.index_cast %c7_i32_73 : i32 to index
    %c0_74 = arith.constant 0 : index
    %c0_75 = arith.constant 0 : index
    %244 = vector.load %arg8[%243, %c0_74, %c0_75] : memref<8x8x256xf32, #tpu.memory_space<vmem>>, vector<1x8x256xf32>
    %245 = vector.shape_cast %244 : vector<1x8x256xf32> to vector<8x256xf32>
    %cst_76 = arith.constant dense<0.000000e+00> : vector<8x256xf32>
    %246 = tpu.matmul %231, %17, %cst_76 {dimension_numbers = #tpu.dot_dimension_numbers<[1], [0], [0], [1], [0, 0, 1, 1], [], []>} : vector<8x64xf32>, vector<64x256xf32>, vector<8x256xf32> -> vector<8x256xf32>
    %247 = arith.addf %245, %246 : vector<8x256xf32>
    %248 = vector.extract_strided_slice %247 {offsets = [0, 0], sizes = [8, 192], strides = [1, 1]} : vector<8x256xf32> to vector<8x192xf32>
    %249 = arith.negf %248 : vector<8x192xf32>
    %250 = math.exp %249 : vector<8x192xf32>
    %cst_77 = arith.constant 1.000000e+00 : f32
    %251 = vector.broadcast %cst_77 : f32 to vector<8x192xf32>
    %252 = arith.addf %251, %250 : vector<8x192xf32>
    %253 = arith.divf %251, %252 : vector<8x192xf32>
    %254 = vector.extract_strided_slice %247 {offsets = [0, 192], sizes = [8, 64], strides = [1, 1]} : vector<8x256xf32> to vector<8x64xf32>
    %255 = math.tanh %254 : vector<8x64xf32>
    %256 = vector.extract_strided_slice %253 {offsets = [0, 0], sizes = [8, 64], strides = [1, 1]} : vector<8x192xf32> to vector<8x64xf32>
    %257 = vector.extract_strided_slice %253 {offsets = [0, 64], sizes = [8, 64], strides = [1, 1]} : vector<8x192xf32> to vector<8x64xf32>
    %258 = vector.extract_strided_slice %253 {offsets = [0, 128], sizes = [8, 64], strides = [1, 1]} : vector<8x192xf32> to vector<8x64xf32>
    %259 = arith.mulf %257, %229 : vector<8x64xf32>
    %260 = arith.mulf %256, %255 : vector<8x64xf32>
    %261 = arith.addf %259, %260 : vector<8x64xf32>
    %262 = math.tanh %261 : vector<8x64xf32>
    %263 = arith.mulf %258, %262 : vector<8x64xf32>
    %264 = vector.extract_strided_slice %263 {offsets = [0, 0], sizes = [8, 32], strides = [1, 1]} : vector<8x64xf32> to vector<8x32xf32>
    %265 = arith.index_cast %c7_i32_73 : i32 to index
    %c0_78 = arith.constant 0 : index
    %c0_79 = arith.constant 0 : index
    %266 = vector.load %arg9[%265, %c0_78, %c0_79] : memref<8x8x64xf32, #tpu.memory_space<vmem>>, vector<1x8x32xf32>
    %267 = vector.shape_cast %266 : vector<1x8x32xf32> to vector<8x32xf32>
    %268 = vector.shape_cast %264 : vector<8x32xf32> to vector<1x8x32xf32>
    tpu.vector_store %arg9[%265, %c0_78, %c0_79], %268 {strides = array<i32>} : memref<8x8x64xf32, #tpu.memory_space<vmem>>, vector<1x8x32xf32>,
    %269 = vector.extract_strided_slice %263 {offsets = [0, 32], sizes = [8, 32], strides = [1, 1]} : vector<8x64xf32> to vector<8x32xf32>
    %c7_i32_80 = arith.constant 7 : i32
    %270 = arith.subi %c7_i32_80, %c7_i32_73 : i32
    %271 = arith.index_cast %270 : i32 to index
    %c0_81 = arith.constant 0 : index
    %c32_82 = arith.constant 32 : index
    %272 = vector.load %arg9[%271, %c0_81, %c32_82] : memref<8x8x64xf32, #tpu.memory_space<vmem>>, vector<1x8x32xf32>
    %273 = vector.shape_cast %272 : vector<1x8x32xf32> to vector<8x32xf32>
    %274 = vector.shape_cast %269 : vector<8x32xf32> to vector<1x8x32xf32>
    tpu.vector_store %arg9[%271, %c0_81, %c32_82], %274 {strides = array<i32>} : memref<8x8x64xf32, #tpu.memory_space<vmem>>, vector<1x8x32xf32>,
    %c8_i32 = arith.constant 8 : i32
    %c0_83 = arith.constant 0 : index
    %c0_84 = arith.constant 0 : index
    %c0_85 = arith.constant 0 : index
    %275 = vector.load %arg9[%c0_83, %c0_84, %c0_85] : memref<8x8x64xf32, #tpu.memory_space<vmem>>, vector<8x8x64xf32>
    %cst_86 = arith.constant dense<0.000000e+00> : vector<8x64xf32>
    %276 = vector.multi_reduction <add>, %275, %cst_86 [1] : vector<8x8x64xf32> to vector<8x64xf32>
    %cst_87 = arith.constant 8.000000e+00 : f32
    %277 = vector.broadcast %cst_87 : f32 to vector<8x64xf32>
    %278 = arith.divf %276, %277 : vector<8x64xf32>
    %cst_88 = arith.constant dense<0xFF800000> : vector<8x64xf32>
    %279 = vector.multi_reduction <maximumf>, %275, %cst_88 [1] : vector<8x8x64xf32> to vector<8x64xf32>
    %280 = vector.extract_strided_slice %275 {offsets = [0, 7, 0], sizes = [8, 1, 64], strides = [1, 1, 1]} : vector<8x8x64xf32> to vector<8x1x64xf32>
    %281 = vector.shape_cast %280 : vector<8x1x64xf32> to vector<8x64xf32>
    %c0_89 = arith.constant 0 : index
    %c0_90 = arith.constant 0 : index
    %282 = vector.load %arg5[%c0_89, %c0_90] : memref<192x4xf32, #tpu.memory_space<vmem>>, vector<64x4xf32>
    %cst_91 = arith.constant dense<0.000000e+00> : vector<8x4xf32>
    %283 = tpu.matmul %278, %282, %cst_91 {dimension_numbers = #tpu.dot_dimension_numbers<[1], [0], [0], [1], [0, 0, 1, 1], [], []>} : vector<8x64xf32>, vector<64x4xf32>, vector<8x4xf32> -> vector<8x4xf32>
    %c64 = arith.constant 64 : index
    %c0_92 = arith.constant 0 : index
    %284 = vector.load %arg5[%c64, %c0_92] : memref<192x4xf32, #tpu.memory_space<vmem>>, vector<64x4xf32>
    %cst_93 = arith.constant dense<0.000000e+00> : vector<8x4xf32>
    %285 = tpu.matmul %279, %284, %cst_93 {dimension_numbers = #tpu.dot_dimension_numbers<[1], [0], [0], [1], [0, 0, 1, 1], [], []>} : vector<8x64xf32>, vector<64x4xf32>, vector<8x4xf32> -> vector<8x4xf32>
    %286 = arith.addf %283, %285 : vector<8x4xf32>
    %c128 = arith.constant 128 : index
    %c0_94 = arith.constant 0 : index
    %287 = vector.load %arg5[%c128, %c0_94] : memref<192x4xf32, #tpu.memory_space<vmem>>, vector<64x4xf32>
    %cst_95 = arith.constant dense<0.000000e+00> : vector<8x4xf32>
    %288 = tpu.matmul %281, %287, %cst_95 {dimension_numbers = #tpu.dot_dimension_numbers<[1], [0], [0], [1], [0, 0, 1, 1], [], []>} : vector<8x64xf32>, vector<64x4xf32>, vector<8x4xf32> -> vector<8x4xf32>
    %289 = arith.addf %286, %288 : vector<8x4xf32>
    %c0_96 = arith.constant 0 : index
    %c0_97 = arith.constant 0 : index
    %290 = vector.load %arg6[%c0_96, %c0_97] : memref<1x4xf32, #tpu.memory_space<vmem>>, vector<1x4xf32>
    %291 = vector.broadcast %290 : vector<1x4xf32> to vector<8x4xf32>
    %292 = arith.addf %289, %291 : vector<8x4xf32>
    %cst_98 = arith.constant dense<0xFF800000> : vector<8xf32>
    %293 = vector.multi_reduction <maximumf>, %292, %cst_98 [1] : vector<8x4xf32> to vector<8xf32>
    %294 = vector.shape_cast %293 : vector<8xf32> to vector<8x1xf32>
    %295 = vector.broadcast %294 : vector<8x1xf32> to vector<8x4xf32>
    %296 = arith.subf %292, %295 : vector<8x4xf32>
    %297 = math.exp %296 : vector<8x4xf32>
    %cst_99 = arith.constant dense<0.000000e+00> : vector<8xf32>
    %298 = vector.multi_reduction <add>, %297, %cst_99 [1] : vector<8x4xf32> to vector<8xf32>
    %299 = vector.shape_cast %298 : vector<8xf32> to vector<8x1xf32>
    %300 = vector.broadcast %299 : vector<8x1xf32> to vector<8x4xf32>
    %301 = arith.divf %297, %300 : vector<8x4xf32>
    %c0_100 = arith.constant 0 : index
    %c0_101 = arith.constant 0 : index
    %302 = vector.load %arg7[%c0_100, %c0_101] : memref<8x4xf32, #tpu.memory_space<vmem>>, vector<8x4xf32>
    tpu.vector_store %arg7[%c0_100, %c0_101], %301 {strides = array<i32>} : memref<8x4xf32, #tpu.memory_space<vmem>>, vector<8x4xf32>,
    return
  }
  func.func @transform_0(%arg0: i32) -> (i32, i32) {
    %c0_i32 = arith.constant 0 : i32
    %c0_i32_0 = arith.constant 0 : i32
    %c0_i32_1 = arith.constant 0 : i32
    return %c0_i32, %c0_i32_0 : i32, i32
  }
  func.func @transform_1(%arg0: i32) -> (i32, i32) {
    %c0_i32 = arith.constant 0 : i32
    %c0_i32_0 = arith.constant 0 : i32
    %c0_i32_1 = arith.constant 0 : i32
    return %c0_i32, %c0_i32_0 : i32, i32
  }
  func.func @transform_2(%arg0: i32) -> (i32, i32) {
    %c0_i32 = arith.constant 0 : i32
    %c0_i32_0 = arith.constant 0 : i32
    %c0_i32_1 = arith.constant 0 : i32
    return %c0_i32, %c0_i32_0 : i32, i32
  }
  func.func @transform_3(%arg0: i32) -> (i32, i32) {
    %c0_i32 = arith.constant 0 : i32
    %c0_i32_0 = arith.constant 0 : i32
    %c0_i32_1 = arith.constant 0 : i32
    return %c0_i32, %c0_i32_0 : i32, i32
  }
  func.func @transform_4(%arg0: i32) -> (i32, i32) {
    %c0_i32 = arith.constant 0 : i32
    %c0_i32_0 = arith.constant 0 : i32
    %c0_i32_1 = arith.constant 0 : i32
    return %c0_i32, %c0_i32_0 : i32, i32
  }
  func.func @transform_5(%arg0: i32) -> (i32, i32) {
    %c0_i32 = arith.constant 0 : i32
    %c0_i32_0 = arith.constant 0 : i32
    %c0_i32_1 = arith.constant 0 : i32
    return %c0_i32, %c0_i32_0 : i32, i32
  }
  func.func @transform_6(%arg0: i32) -> (i32, i32) {
    %c0_i32 = arith.constant 0 : i32
    %c0_i32_0 = arith.constant 0 : i32
    %c0_i32_1 = arith.constant 0 : i32
    return %c0_i32, %c0_i32_0 : i32, i32
  }
}

</mosaic_0001>

<bundles_post_ra>
// kernel: tpu_custom_call.1
= control target key start
LH: loop header
LB: loop body
LE: loop exit
PB: predicated region body
PF: predicated region fallthrough
CT: control target
= control target key end

     0   :  { %11 = vsyncpa [#allocation5], 0  ;;  %s1701_s24 = smov [#allocation4]   ;;  %s1702_s26 = smov 256   ;;  %s2400_s0 = inlined_call_operand.vmem [shape: s32[64,2], index: 0, kind: input, shape index: {}]   ;;  %s2401_s1 = inlined_call_operand.vmem [shape: f32[100,256], index: 1, kind: input, shape index: {}]   ;;  %s2402_s2 = inlined_call_operand.vmem [shape: f32[1,256], index: 2, kind: input, shape index: {}]   ;;  %s2403_s3 = inlined_call_operand.hbm [shape: f32[64,256], index: 3, kind: input, shape index: {}]   ;;  %s2404_s4 = inlined_call_operand.vmem [shape: f32[192,4], index: 4, kind: input, shape index: {}]   ;;  %s2405_s5 = inlined_call_operand.vmem [shape: f32[1,4], index: 5, kind: input, shape index: {}]   ;;  %s2406_s6 = inlined_call_operand.vmem [shape: f32[8,4], index: 6, kind: output, shape index: {}]  }
   0x1   :  { %s22_s23 = sshll.u32 %s2403_s3, 4  ;;  %s24_s25 = sshll.u32 %s1701_s24, 4  ;;  %s23_s23 = int_to_ptr.hbm [resolvable:$true] %s22_s23  ;;  %s25_s25 = int_to_ptr.vmem [resolvable:$true] %s24_s25 }
   0x2   :  { %s1703_s27 = smov 16  }
   0x3   :  { %30 = dma.hbm_to_vmem [thread:$0]  %s23_s23, 2048, %s25_s25, [#allocation5], %s1702_s26, %s1702_s26, %s1703_s27  }
   0x4   :  { %1699 = dma.done.wait [#allocation5], 2048  }
   0x5   :  { %1700 = vsyncadd [#allocation5], 4294965248  ;;  %v1704_v0 = vmov 0   ;;  %v1705_v1 = vmov 1   ;;  %vm194_vm0 = vcmask 1043456   ;;  %v39_v2 = vld [vmem:[%s2400_s0] sm:$0xff]  ;;  %v47_v47 = vlaneseq }
   0x6   :  { %1560 = vset.pattern.permute.xlu0 %v1704_v0  ;;  %1563 = vset.pattern.permute.xlu1 %v1705_v1  ;;  %v161_v3 = vld [vmem:[%s2401_s1 + $0xc0] sm:$0xf]  ;;  %v162_v4 = vld [vmem:[%s2401_s1 + $0xc8] sm:$0xf]  ;;  %v159_v5 = vld [vmem:[%s2401_s1 + $0xb0] sm:$0xff]  ;;  %v1706_v43 = vmov 0.0  }
   0x7   :  { %1562 = vset.pattern.permute.xlu2 %v1704_v0  ;;  %50 = vperm.xlu0 %1560, %v39_v2   ;;  %v160_v6 = vld [vmem:[%s2401_s1 + $0xb8] sm:$0xff]  ;;  %v157_v7 = vld [vmem:[%s2401_s1 + $0xa0] sm:$0xff]  ;;  %v158_v8 = vld [vmem:[%s2401_s1 + $0xa8] sm:$0xff]  ;;  %v1926_v48 = vand.u32 127, %v47_v47  ;;  %vm169_vm3 = vcmask 818176   ;;  %s1707_s8 = smov 64  }
   0x8   :  { %1501 = vmatpush.msk.msra.mxu0 %vm194_vm0, %v161_v3  ;;  %1510 = vmatpush.msk.msra.mxu1 %vm194_vm0, %v162_v4  ;;  %v1771_v9 = vld [vmem:[#allocation4 + $0x70] sm:$0xff]  ;;  %v1773_v10 = vld [vmem:[#allocation4 + $0x78] sm:$0xff]  ;;  %v1779_v12 = vld [vmem:[#allocation4 + $0x60] sm:$0xff]  ;;  %vm419_vm13 = vcmask 261120   ;;  %vm317_vm14 = vcmask 523264   ;;  %vm422_vm15 = vcmask 523520  }
   0x9   :  { %v155_v11 = vld [vmem:[%s2401_s1 + $0x90] sm:$0xff]  ;;  %329 = vmatpush.msra.mxu2 %v1771_v9  ;;  %v1781_v13 = vld [vmem:[#allocation4 + $0x68] sm:$0xff]  ;;  %v156_v14 = vld [vmem:[%s2401_s1 + $0x98] sm:$0xff]  ;;  %349 = vmatpush.msra.mxu3 %v1773_v10 }
   0xa   :  { %205 = vmatpush.msra.mxu0 %v159_v5  ;;  %246 = vmatpush.msra.mxu1 %v160_v6  ;;  %v1787_v15 = vld [vmem:[#allocation4 + $0x50] sm:$0xff]  ;;  %v153_v16 = vld [vmem:[%s2401_s1 + $0x80] sm:$0xff]  ;;  %v154_v17 = vld [vmem:[%s2401_s1 + $0x88] sm:$0xff] }
   0xb   :  { %330 = vmatpush.msra.mxu2 %v1779_v12  ;;  %350 = vmatpush.msra.mxu3 %v1781_v13  ;;  %v151_v18 = vld [vmem:[%s2401_s1 + $0x70] sm:$0xff]  ;;  %v1801_v19 = vld [vmem:[#allocation4 + $0x58] sm:$0xff]  ;;  %v1807_v21 = vld [vmem:[#allocation4 + $0x40] sm:$0xff] }
   0xc   :  { %206 = vmatpush.msra.mxu0 %v157_v7  ;;  %247 = vmatpush.msra.mxu1 %v158_v8  ;;  %v152_v20 = vld [vmem:[%s2401_s1 + $0x78] sm:$0xff]  ;;  %v149_v22 = vld [vmem:[%s2401_s1 + $0x60] sm:$0xff]  ;;  %v1812_v23 = vld [vmem:[#allocation4 + $0x48] sm:$0xff] }
   0xd   :  { %331 = vmatpush.msra.mxu2 %v1787_v15  ;;  %351 = vmatpush.msra.mxu3 %v1801_v19  ;;  %v150_v24 = vld [vmem:[%s2401_s1 + $0x68] sm:$0xff]  ;;  %v147_v25 = vld [vmem:[%s2401_s1 + $0x50] sm:$0xff]  ;;  %v148_v26 = vld [vmem:[%s2401_s1 + $0x58] sm:$0xff] }
   0xe   :  { %207 = vmatpush.msra.mxu0 %v155_v11  ;;  %248 = vmatpush.msra.mxu1 %v156_v14  ;;  %v1826_v27 = vld [vmem:[#allocation4 + $0x30] sm:$0xff]  ;;  %v1828_v28 = vld [vmem:[#allocation4 + $0x38] sm:$0xff]  ;;  %v145_v29 = vld [vmem:[%s2401_s1 + $0x40] sm:$0xff] }
   0xf   :  { %1561 = vset.pattern.permute.xlu0 %v1705_v1  ;;  %332 = vmatpush.msra.mxu2 %v1807_v21  ;;  %v146_v30 = vld [vmem:[%s2401_s1 + $0x48] sm:$0xff]  ;;  %v1838_v31 = vld [vmem:[#allocation4 + $0x20] sm:$0xff]  ;;  %v143_v33 = vld [vmem:[%s2401_s1 + $0x30] sm:$0xff] }
  0x10   :  { %208 = vmatpush.msra.mxu0 %v153_v16  ;;  %82 = vperm.xlu0 %1561, %v39_v2   ;;  %v1840_v32 = vld [vmem:[#allocation4 + $0x28] sm:$0xff]  ;;  %v144_v34 = vld [vmem:[%s2401_s1 + $0x38] sm:$0xff]  ;;  %v1848_v35 = vld [vmem:[#allocation4 + $0x10] sm:$0xff] }
  0x11   :  { %249 = vmatpush.msra.mxu1 %v154_v17  ;;  %352 = vmatpush.msra.mxu3 %v1812_v23  ;;  %v1850_v36 = vld [vmem:[#allocation4 + $0x18] sm:$0xff]  ;;  %v141_v37 = vld [vmem:[%s2401_s1 + $0x20] sm:$0xff]  ;;  %v142_v38 = vld [vmem:[%s2401_s1 + $0x28] sm:$0xff] }
  0x12   :  { %209 = vmatpush.msra.mxu0 %v151_v18  ;;  %333 = vmatpush.msra.mxu2 %v1826_v27  ;;  %v1860_v39 = vld [vmem:[#allocation4] sm:$0xff]  ;;  %v1862_v40 = vld [vmem:[#allocation4 + $0x8] sm:$0xff]  ;;  %v139_v41 = vld [vmem:[%s2401_s1 + $0x10] sm:$0xff] }
  0x13   :  { %250 = vmatpush.msra.mxu1 %v152_v20  ;;  %353 = vmatpush.msra.mxu3 %v1828_v28  ;;  %v140_v42 = vld [vmem:[%s2401_s1 + $0x18] sm:$0xff]  ;;  %v137_v44 = vld [vmem:[%s2401_s1] sm:$0xff]  ;;  %v138_v45 = vld [vmem:[%s2401_s1 + $0x8] sm:$0xff] }
  0x14   :  { %210 = vmatpush.msra.mxu0 %v149_v22  ;;  %334 = vmatpush.msra.mxu2 %v1838_v31  ;;  %v163_v51 = vld [vmem:[%s2402_s2] sm:$0x3] }
  0x15   :  { %251 = vmatpush.msra.mxu1 %v150_v24  ;;  %354 = vmatpush.msra.mxu3 %v1840_v32  ;;  %v1956_v52 = vperm.slane %v163_v51, 1  ;;  %v1960_v58 = vperm.slane %v163_v51, 0  ;;  %v40_v24 = vld [vmem:[%s2400_s0 + $0x8] sm:$0xff] }
  0x16   :  { %211 = vmatpush.msra.mxu0 %v147_v25  ;;  %335 = vmatpush.msra.mxu2 %v1848_v35 }
  0x17   :  { %252 = vmatpush.msra.mxu1 %v148_v26  ;;  %355 = vmatpush.msra.mxu3 %v1850_v36 }
  0x18   :  { %212 = vmatpush.msra.mxu0 %v145_v29  ;;  %336 = vmatpush.msra.mxu2 %v1860_v39 }
  0x19   :  { %253 = vmatpush.msra.mxu1 %v146_v30  ;;  %356 = vmatpush.msra.mxu3 %v1862_v40 }
  0x1a   :  { %213 = vmatpush.msra.mxu0 %v143_v33  ;;  %337 = vmatmul.f32.vlgmr.msra.gmra.mxu2 %v1706_v43 }
  0x1b   :  { %254 = vmatpush.msra.mxu1 %v144_v34  ;;  %357 = vmatmul.f32.vlgmr.msra.gmra.mxu3 %v1706_v43 }
  0x1c   :  { %214 = vmatpush.msra.mxu0 %v141_v37  ;;  %438 = vmatpush.msrb.mxu2 %v1771_v9 }
  0x1d   :  { %255 = vmatpush.msra.mxu1 %v142_v38  ;;  %458 = vmatpush.msrb.mxu3 %v1773_v10 }
  0x1e   :  { %215 = vmatpush.msra.mxu0 %v139_v41  ;;  %439 = vmatpush.msrb.mxu2 %v1779_v12 }
  0x1f   :  { %256 = vmatpush.msra.mxu1 %v140_v42  ;;  %459 = vmatpush.msrb.mxu3 %v1781_v13 }
  0x20   :  { %216 = vmatpush.msra.mxu0 %v137_v44  ;;  %440 = vmatpush.msrb.mxu2 %v1787_v15 }
  0x21   :  { %257 = vmatpush.msra.mxu1 %v138_v45  ;;  %460 = vmatpush.msrb.mxu3 %v1801_v19 }
  0x22   :  { %868 = vmatpush.msrb.mxu0 %v1771_v9  ;;  %441 = vmatpush.msrb.mxu2 %v1807_v21 }
  0x23   :  { %888 = vmatpush.msrb.mxu1 %v1773_v10  ;;  %461 = vmatpush.msrb.mxu3 %v1812_v23 }
  0x24   :  { %869 = vmatpush.msrb.mxu0 %v1779_v12  ;;  %442 = vmatpush.msrb.mxu2 %v1826_v27 }
  0x25   :  { %889 = vmatpush.msrb.mxu1 %v1781_v13  ;;  %462 = vmatpush.msrb.mxu3 %v1828_v28 }
  0x26   :  { %870 = vmatpush.msrb.mxu0 %v1787_v15  ;;  %443 = vmatpush.msrb.mxu2 %v1838_v31 }
  0x27   :  { %890 = vmatpush.msrb.mxu1 %v1801_v19  ;;  %463 = vmatpush.msrb.mxu3 %v1840_v32 }
  0x28   :  { %871 = vmatpush.msrb.mxu0 %v1807_v21  ;;  %444 = vmatpush.msrb.mxu2 %v1848_v35 }
  0x29   :  { %891 = vmatpush.msrb.mxu1 %v1812_v23  ;;  %464 = vmatpush.msrb.mxu3 %v1850_v36 }
  0x2a   :  { %872 = vmatpush.msrb.mxu0 %v1826_v27  ;;  %445 = vmatpush.msrb.mxu2 %v1860_v39 }
  0x2b   :  { %892 = vmatpush.msrb.mxu1 %v1828_v28  ;;  %465 = vmatpush.msrb.mxu3 %v1862_v40 }
  0x2c   :  { %873 = vmatpush.msrb.mxu0 %v1838_v31  ;;  %546 = vmatpush.msra.mxu2 %v1771_v9 }
  0x2d   :  { %893 = vmatpush.msrb.mxu1 %v1840_v32  ;;  %566 = vmatpush.msra.mxu3 %v1773_v10 }
  0x2e   :  { %874 = vmatpush.msrb.mxu0 %v1848_v35  ;;  %547 = vmatpush.msra.mxu2 %v1779_v12 }
  0x2f   :  { %894 = vmatpush.msrb.mxu1 %v1850_v36  ;;  %567 = vmatpush.msra.mxu3 %v1781_v13 }
  0x30   :  { %875 = vmatpush.msrb.mxu0 %v1860_v39  ;;  %548 = vmatpush.msra.mxu2 %v1787_v15 }
  0x31   :  { %895 = vmatpush.msrb.mxu1 %v1862_v40  ;;  %568 = vmatpush.msra.mxu3 %v1801_v19 }
  0x32   :  { %549 = vmatpush.msra.mxu2 %v1807_v21 }
  0x33   :  { %569 = vmatpush.msra.mxu3 %v1812_v23 }
  0x34   :  { %550 = vmatpush.msra.mxu2 %v1826_v27 }
  0x35   :  { %570 = vmatpush.msra.mxu3 %v1828_v28 }
  0x36   :  { %551 = vmatpush.msra.mxu2 %v1838_v31 }
  0x37   :  { %571 = vmatpush.msra.mxu3 %v1840_v32 }
  0x38   :  { %552 = vmatpush.msra.mxu2 %v1848_v35 }
  0x39   :  { %572 = vmatpush.msra.mxu3 %v1850_v36 }
  0x3a   :  { %553 = vmatpush.msra.mxu2 %v1860_v39 }
  0x3b   :  { %573 = vmatpush.msra.mxu3 %v1862_v40 }
  0x79   :  { %v51_v46 = vpop.permute.xlu0 %50 }
  0x7a   :  { %vm73_vm1 = vcmp.eq.s32.totalorder %v1926_v48, %v51_v46 }
  0x82   :  { %v83_v49 = vpop.permute.xlu0 %82 }
  0x83   :  { %vm105_vm2 = vcmp.eq.s32.totalorder %v1926_v48, %v83_v49 }
  0x84   :  { %vm113_vm4 = vmor %vm73_vm1, %vm105_vm2 }
  0x85   :  { %v1493_v50 = vsel %vm113_vm4, 1.0, %v1706_v43 }
  0x86   :  { %1502 = vmatmul.msk.f32.vlgmr.msra.gmra.mxu0 %vm169_vm3, %v1493_v50  ;;  %1511 = vmatmul.msk.f32.vlgmr.msra.gmra.mxu1 %vm169_vm3, %v1493_v50 }
  0x87   :  { %1080 = vmatpush.msra.mxu0 %v1771_v9  ;;  %1100 = vmatpush.msra.mxu1 %v1773_v10 }
  0x89   :  { %1081 = vmatpush.msra.mxu0 %v1779_v12  ;;  %1101 = vmatpush.msra.mxu1 %v1781_v13 }
  0x8b   :  { %1082 = vmatpush.msra.mxu0 %v1787_v15  ;;  %1102 = vmatpush.msra.mxu1 %v1801_v19 }
  0x8d   :  { %1083 = vmatpush.msra.mxu0 %v1807_v21  ;;  %1103 = vmatpush.msra.mxu1 %v1812_v23 }
  0x8f   :  { %1084 = vmatpush.msra.mxu0 %v1826_v27  ;;  %1104 = vmatpush.msra.mxu1 %v1828_v28 }
  0x91   :  { %1085 = vmatpush.msra.mxu0 %v1838_v31  ;;  %1105 = vmatpush.msra.mxu1 %v1840_v32 }
  0x93   :  { %1086 = vmatpush.msra.mxu0 %v1848_v35  ;;  %1106 = vmatpush.msra.mxu1 %v1850_v36 }
  0x95   :  { %1087 = vmatpush.msra.mxu0 %v1860_v39  ;;  %1107 = vmatpush.msra.mxu1 %v1862_v40 }
  0x9d   :  { %v338_v61 = vpop.f32.mrf.mxu2 }
  0x9e   :  { %v358_v54 = vpop.f32.mrf.mxu3 }
 0x103   :  { %v259_v53 = vpop.f32.mrf.mxu1  ;;  %v218_v59 = vpop.f32.mrf.mxu0 }
 0x104   :  { %v260_v55 = vadd.f32 %v259_v53, %v1956_v52  ;;  %v219_v60 = vadd.f32 %v218_v59, %v1960_v58 }
 0x106   :  { %v362_v56 = vadd.f32 %v358_v54, %v260_v55  ;;  %v361_v62 = vadd.f32 %v338_v61, %v219_v60 }
 0x108   :  { %1573 = vtanh.f32 %v362_v56  ;;  %v1519_v63 = vmul.f32 -1.442695, %v361_v62  ;;  %v1520_v33 = vmul.f32 -1.442695, %v362_v56 }
 0x10a   :  { %1575 = vpow2.f32 %v1519_v63 }
 0x10e   :  { %v1574_v57 = vpop.eup %1573 }
 0x10f   :  { %404 = vrot.lane.b32.xlu1 %v1574_v57, %s1707_s8 }
 0x110   :  { %v1576_v2 = vpop.eup %1575 }
 0x111   :  { %v369_v3 = vadd.f32 1.0, %v1576_v2  ;;  %v41_v2 = vld [vmem:[%s2400_s0 + $0x10] sm:$0xff] }
 0x113   :  { %1577 = vrcp.f32 %v369_v3  ;;  %v382_v11 = vand.u32 2147483648, %v369_v3  ;;  %vm376_vm6 = vweird.f32 %v369_v3  ;;  %v380_v14 = vand.u32 2147483647, %v369_v3 }
 0x115   :  { %v383_v17 = vor.u32 1.1754944e-38, %v382_v11  ;;  %vm381_vm8 = vcmp.eq.f32.partialorder %v380_v14, 8.507059e+37 }
 0x119   :  { %v1578_v4 = vpop.eup %1577 }
 0x11a   :  { %v372_v5 = vmul.f32 %v1578_v4, %v369_v3  ;;  %vm377_vm5 = vweird.f32 %v1578_v4 }
 0x11b   :  { %vm378_vm7 = vmor %vm376_vm6, %vm377_vm5 }
 0x11c   :  { %v373_v6 = vsub.f32 1.0, %v372_v5 }
 0x11e   :  { %v374_v7 = vmul.f32 %v1578_v4, %v373_v6 }
 0x120   :  { %v375_v8 = vadd.f32 %v1578_v4, %v374_v7 }
 0x122   :  { %v379_v16 = vsel %vm378_vm7, %v1578_v4, %v375_v8 }
 0x123   :  { %v384_v20 = vsel %vm381_vm8, %v383_v17, %v379_v16 }
 0x124   :  { %v402_v25 = vmul.f32 0.0, %v384_v20 }
 0x181   :  { %v405_v18 = vpop.permute.xlu1 %404 }
 0x182   :  { %v407_v22 = vmul.f32 %v405_v18, %v384_v20 }
 0x184   :  { %409 = vrot.lane.b32.xlu1 %v407_v22, %s1707_s8 }
 0x18c   :  { %85 = vperm.xlu1 %1563, %v40_v24  }
 0x194   :  { %1564 = vset.pattern.permute.xlu1 %v1704_v0 }
 0x1f6   :  { %v410_v26 = vpop.permute.xlu1 %409 }
 0x1f7   :  { %v1968_v29 = vadd.f32 %v410_v26, %v402_v25 }
 0x1f9   :  { %1579 = vtanh.f32 %v1968_v29 }
 0x1fa   :  { %1581 = vpow2.f32 %v1520_v33 }
 0x1fe   :  { %v86_v55 = vpop.permute.xlu1 %85 }
 0x1ff   :  { %v1580_v30 = vpop.eup %1579  ;;  %vm106_vm0 = vcmp.eq.s32.totalorder %v1926_v48, %v86_v55 }
 0x200   :  { %415 = vrot.lane.b32.xlu2 %v1580_v30, %s1707_s8  ;;  %v1582_v34 = vpop.eup %1581 }
 0x201   :  { %v370_v37 = vadd.f32 1.0, %v1582_v34 }
 0x203   :  { %1583 = vrcp.f32 %v370_v37  ;;  %v397_v46 = vand.u32 2147483648, %v370_v37  ;;  %vm391_vm10 = vweird.f32 %v370_v37  ;;  %v395_v47 = vand.u32 2147483647, %v370_v37 }
 0x205   :  { %v398_v50 = vor.u32 1.1754944e-38, %v397_v46  ;;  %vm396_vm12 = vcmp.eq.f32.partialorder %v395_v47, 8.507059e+37 }
 0x208   :  { %53 = vperm.xlu2 %1562, %v40_v24  }
 0x209   :  { %v1584_v38 = vpop.eup %1583 }
 0x20a   :  { %v387_v41 = vmul.f32 %v1584_v38, %v370_v37  ;;  %vm392_vm9 = vweird.f32 %v1584_v38 }
 0x20b   :  { %vm393_vm11 = vmor %vm391_vm10, %vm392_vm9 }
 0x20c   :  { %v388_v42 = vsub.f32 1.0, %v387_v41 }
 0x20e   :  { %v389_v44 = vmul.f32 %v1584_v38, %v388_v42 }
 0x210   :  { %v390_v45 = vadd.f32 %v1584_v38, %v389_v44 }
 0x212   :  { %v394_v49 = vsel %vm393_vm11, %v1584_v38, %v390_v45 }
 0x213   :  { %v399_v51 = vsel %vm396_vm12, %v398_v50, %v394_v49 }
 0x25a   :  { %v416_v53 = vpop.permute.xlu2 %415 }
 0x25b   :  { %v418_v54 = vmul.f32 %v416_v53, %v399_v51 }
 0x25d   :  { %420 = vst.msk [vmem:[#allocation3] sm:$0xff] %vm419_vm13, %v418_v54  ;;  %1521 = vmatmul.msk.f32.vlgmr.msrb.gmra.mxu2 %vm317_vm14, %v418_v54  ;;  %1522 = vmatmul.msk.f32.vlgmr.msrb.gmra.mxu3 %vm317_vm14, %v418_v54 }
 0x25e   :  { %423 = vst.msk [vmem:[#allocation3 + $0x38] sm:$0xff] %vm422_vm15, %v418_v54  ;;  %654 = vmatpush.msrb.mxu2 %v1771_v9  ;;  %674 = vmatpush.msrb.mxu3 %v1773_v10 }
 0x260   :  { %655 = vmatpush.msrb.mxu2 %v1779_v12  ;;  %675 = vmatpush.msrb.mxu3 %v1781_v13 }
 0x262   :  { %v54_v56 = vpop.permute.xlu2 %53  ;;  %656 = vmatpush.msrb.mxu2 %v1787_v15  ;;  %676 = vmatpush.msrb.mxu3 %v1801_v19 }
 0x263   :  { %vm74_vm1 = vcmp.eq.s32.totalorder %v1926_v48, %v54_v56 }
 0x264   :  { %vm114_vm2 = vmor %vm74_vm1, %vm106_vm0  ;;  %657 = vmatpush.msrb.mxu2 %v1807_v21  ;;  %677 = vmatpush.msrb.mxu3 %v1812_v23 }
 0x265   :  { %v1494_v57 = vsel %vm114_vm2, 1.0, %v1706_v43 }
 0x266   :  { %1503 = vmatmul.msk.f32.gmra.mxu0 %vm169_vm3, %v1494_v57  ;;  %1512 = vmatmul.msk.f32.gmra.mxu1 %vm169_vm3, %v1494_v57 }
 0x267   :  { %658 = vmatpush.msrb.mxu2 %v1826_v27  ;;  %678 = vmatpush.msrb.mxu3 %v1828_v28 }
 0x269   :  { %659 = vmatpush.msrb.mxu2 %v1838_v31  ;;  %679 = vmatpush.msrb.mxu3 %v1840_v32 }
 0x26b   :  { %660 = vmatpush.msrb.mxu2 %v1848_v35  ;;  %680 = vmatpush.msrb.mxu3 %v1850_v36 }
 0x26d   :  { %661 = vmatpush.msrb.mxu2 %v1860_v39  ;;  %681 = vmatpush.msrb.mxu3 %v1862_v40 }
 0x2e0   :  { %v467_v61 = vpop.f32.mrf.mxu3  ;;  %v447_v5 = vpop.f32.mrf.mxu2 }
 0x2e3   :  { %v262_v59 = vpop.f32.mrf.mxu1  ;;  %v221_v3 = vpop.f32.mrf.mxu0 }
 0x2e4   :  { %v263_v60 = vadd.f32 %v262_v59, %v1956_v52  ;;  %v222_v4 = vadd.f32 %v221_v3, %v1960_v58 }
 0x2e6   :  { %v471_v62 = vadd.f32 %v467_v61, %v263_v60  ;;  %v470_v6 = vadd.f32 %v447_v5, %v222_v4 }
 0x2e8   :  { %1585 = vtanh.f32 %v471_v62  ;;  %v1523_v7 = vmul.f32 -1.442695, %v470_v6 }
 0x2ea   :  { %1587 = vpow2.f32 %v1523_v7 }
 0x2ee   :  { %v1586_v63 = vpop.eup %1585 }
 0x2ef   :  { %513 = vrot.lane.b32.xlu2 %v1586_v63, %s1707_s8 }
 0x2f0   :  { %v1588_v8 = vpop.eup %1587 }
 0x2f1   :  { %v478_v11 = vadd.f32 1.0, %v1588_v8 }
 0x2f3   :  { %1589 = vrcp.f32 %v478_v11  ;;  %v491_v22 = vand.u32 2147483648, %v478_v11  ;;  %vm485_vm5 = vweird.f32 %v478_v11  ;;  %v489_v24 = vand.u32 2147483647, %v478_v11 }
 0x2f5   :  { %v492_v26 = vor.u32 1.1754944e-38, %v491_v22  ;;  %vm490_vm7 = vcmp.eq.f32.partialorder %v489_v24, 8.507059e+37 }
 0x2f7   :  { %56 = vperm.xlu2 %1562, %v41_v2  }
 0x2f9   :  { %v1590_v14 = vpop.eup %1589 }
 0x2fa   :  { %v481_v16 = vmul.f32 %v1590_v14, %v478_v11  ;;  %vm486_vm4 = vweird.f32 %v1590_v14 }
 0x2fb   :  { %vm487_vm6 = vmor %vm485_vm5, %vm486_vm4 }
 0x2fc   :  { %v482_v17 = vsub.f32 1.0, %v481_v16 }
 0x2fe   :  { %v483_v18 = vmul.f32 %v1590_v14, %v482_v17 }
 0x2ff   :  { %1565 = vset.pattern.permute.xlu2 %v1705_v1 }
 0x300   :  { %v484_v20 = vadd.f32 %v1590_v14, %v483_v18 }
 0x302   :  { %v488_v25 = vsel %vm487_vm6, %v1590_v14, %v484_v20 }
 0x303   :  { %v493_v33 = vsel %vm490_vm7, %v492_v26, %v488_v25 }
 0x304   :  { %v511_v37 = vmul.f32 %v493_v33, %v1968_v29  ;;  %v1524_v29 = vmul.f32 -1.442695, %v471_v62 }
 0x349   :  { %v514_v30 = vpop.permute.xlu2 %513 }
 0x34a   :  { %v516_v34 = vmul.f32 %v514_v30, %v493_v33 }
 0x34c   :  { %518 = vrot.lane.b32.xlu0 %v516_v34, %s1707_s8 }
 0x351   :  { %v57_v42 = vpop.permute.xlu2 %56 }
 0x352   :  { %vm75_vm8 = vcmp.eq.s32.totalorder %v1926_v48, %v57_v42 }
 0x354   :  { %88 = vperm.xlu0 %1561, %v41_v2  }
 0x35c   :  { %1566 = vset.pattern.permute.xlu0 %v1704_v0 }
 0x3be   :  { %v519_v38 = vpop.permute.xlu0 %518 }
 0x3bf   :  { %v2007_v41 = vadd.f32 %v519_v38, %v511_v37 }
 0x3c1   :  { %1591 = vtanh.f32 %v2007_v41 }
 0x3c2   :  { %1593 = vpow2.f32 %v1524_v29 }
 0x3c6   :  { %v89_v44 = vpop.permute.xlu0 %88 }
 0x3c7   :  { %v1592_v45 = vpop.eup %1591  ;;  %vm107_vm9 = vcmp.eq.s32.totalorder %v1926_v48, %v89_v44 }
 0x3c8   :  { %vm115_vm10 = vmor %vm75_vm8, %vm107_vm9  ;;  %524 = vrot.lane.b32.xlu1 %v1592_v45, %s1707_s8  ;;  %v1594_v47 = vpop.eup %1593  ;;  %v42_v45 = vld [vmem:[%s2400_s0 + $0x18] sm:$0xff] }
 0x3c9   :  { %v1495_v46 = vsel %vm115_vm10, 1.0, %v1706_v43  ;;  %v479_v49 = vadd.f32 1.0, %v1594_v47 }
 0x3ca   :  { %1504 = vmatmul.msk.f32.gmra.mxu0 %vm169_vm3, %v1495_v46  ;;  %1513 = vmatmul.msk.f32.gmra.mxu1 %vm169_vm3, %v1495_v46 }
 0x3cb   :  { %1595 = vrcp.f32 %v479_v49  ;;  %v506_v56 = vand.u32 2147483648, %v479_v49  ;;  %vm500_vm12 = vweird.f32 %v479_v49  ;;  %v504_v57 = vand.u32 2147483647, %v479_v49 }
 0x3cd   :  { %v507_v60 = vor.u32 1.1754944e-38, %v506_v56  ;;  %vm505_vm1 = vcmp.eq.f32.partialorder %v504_v57, 8.507059e+37 }
 0x3d1   :  { %v1596_v50 = vpop.eup %1595 }
 0x3d2   :  { %v496_v51 = vmul.f32 %v1596_v50, %v479_v49  ;;  %vm501_vm11 = vweird.f32 %v1596_v50 }
 0x3d3   :  { %vm502_vm0 = vmor %vm500_vm12, %vm501_vm11 }
 0x3d4   :  { %v497_v53 = vsub.f32 1.0, %v496_v51 }
 0x3d6   :  { %v498_v54 = vmul.f32 %v1596_v50, %v497_v53 }
 0x3d8   :  { %v499_v55 = vadd.f32 %v1596_v50, %v498_v54 }
 0x3da   :  { %v503_v59 = vsel %vm502_vm0, %v1596_v50, %v499_v55 }
 0x3db   :  { %v508_v61 = vsel %vm505_vm1, %v507_v60, %v503_v59 }
 0x43a   :  { %v525_v63 = vpop.permute.xlu1 %524 }
 0x43b   :  { %v527_v62 = vmul.f32 %v525_v63, %v508_v61 }
 0x43d   :  { %529 = vst.msk [vmem:[#allocation3 + $0x8] sm:$0xff] %vm419_vm13, %v527_v62  ;;  %1525 = vmatmul.msk.f32.vlgmr.msra.gmra.mxu2 %vm317_vm14, %v527_v62  ;;  %1526 = vmatmul.msk.f32.vlgmr.msra.gmra.mxu3 %vm317_vm14, %v527_v62 }
 0x43e   :  { %531 = vst.msk [vmem:[#allocation3 + $0x30] sm:$0xff] %vm422_vm15, %v527_v62  ;;  %762 = vmatpush.msra.mxu2 %v1771_v9  ;;  %782 = vmatpush.msra.mxu3 %v1773_v10 }
 0x440   :  { %763 = vmatpush.msra.mxu2 %v1779_v12  ;;  %783 = vmatpush.msra.mxu3 %v1781_v13 }
 0x442   :  { %764 = vmatpush.msra.mxu2 %v1787_v15  ;;  %784 = vmatpush.msra.mxu3 %v1801_v19 }
 0x444   :  { %765 = vmatpush.msra.mxu2 %v1807_v21  ;;  %785 = vmatpush.msra.mxu3 %v1812_v23 }
 0x446   :  { %766 = vmatpush.msra.mxu2 %v1826_v27  ;;  %786 = vmatpush.msra.mxu3 %v1828_v28 }
 0x447   :  { %v265_v2 = vpop.f32.mrf.mxu1  ;;  %v224_v7 = vpop.f32.mrf.mxu0 }
 0x448   :  { %767 = vmatpush.msra.mxu2 %v1838_v31  ;;  %787 = vmatpush.msra.mxu3 %v1840_v32  ;;  %v266_v3 = vadd.f32 %v265_v2, %v1956_v52  ;;  %v225_v11 = vadd.f32 %v224_v7, %v1960_v58 }
 0x44a   :  { %768 = vmatpush.msra.mxu2 %v1848_v35  ;;  %788 = vmatpush.msra.mxu3 %v1850_v36 }
 0x44c   :  { %769 = vmatpush.msra.mxu2 %v1860_v39  ;;  %789 = vmatpush.msra.mxu3 %v1862_v40 }
 0x4c0   :  { %v575_v4 = vpop.f32.mrf.mxu3  ;;  %v555_v8 = vpop.f32.mrf.mxu2 }
 0x4c1   :  { %v579_v5 = vadd.f32 %v575_v4, %v266_v3  ;;  %v578_v14 = vadd.f32 %v555_v8, %v225_v11 }
 0x4c3   :  { %1597 = vtanh.f32 %v579_v5  ;;  %v1527_v16 = vmul.f32 -1.442695, %v578_v14  ;;  %v1528_v50 = vmul.f32 -1.442695, %v579_v5 }
 0x4c5   :  { %1599 = vpow2.f32 %v1527_v16 }
 0x4c9   :  { %v1598_v6 = vpop.eup %1597 }
 0x4ca   :  { %621 = vrot.lane.b32.xlu1 %v1598_v6, %s1707_s8 }
 0x4cb   :  { %v1600_v17 = vpop.eup %1599 }
 0x4cc   :  { %v586_v18 = vadd.f32 1.0, %v1600_v17 }
 0x4ce   :  { %1601 = vrcp.f32 %v586_v18  ;;  %v599_v30 = vand.u32 2147483648, %v586_v18  ;;  %vm593_vm4 = vweird.f32 %v586_v18  ;;  %v597_v33 = vand.u32 2147483647, %v586_v18 }
 0x4d0   :  { %v600_v37 = vor.u32 1.1754944e-38, %v599_v30  ;;  %vm598_vm6 = vcmp.eq.f32.partialorder %v597_v33, 8.507059e+37 }
 0x4d2   :  { %59 = vperm.xlu1 %1564, %v42_v45  }
 0x4d4   :  { %v1602_v20 = vpop.eup %1601 }
 0x4d5   :  { %v589_v22 = vmul.f32 %v1602_v20, %v586_v18  ;;  %vm594_vm2 = vweird.f32 %v1602_v20 }
 0x4d6   :  { %vm595_vm5 = vmor %vm593_vm4, %vm594_vm2 }
 0x4d7   :  { %v590_v24 = vsub.f32 1.0, %v589_v22 }
 0x4d9   :  { %v591_v25 = vmul.f32 %v1602_v20, %v590_v24 }
 0x4da   :  { %1567 = vset.pattern.permute.xlu1 %v1705_v1 }
 0x4db   :  { %v592_v26 = vadd.f32 %v1602_v20, %v591_v25 }
 0x4dd   :  { %v596_v34 = vsel %vm595_vm5, %v1602_v20, %v592_v26 }
 0x4de   :  { %v601_v42 = vsel %vm598_vm6, %v600_v37, %v596_v34 }
 0x4df   :  { %v619_v46 = vmul.f32 %v601_v42, %v2007_v41 }
 0x53c   :  { %v622_v38 = vpop.permute.xlu1 %621 }
 0x53d   :  { %v624_v44 = vmul.f32 %v622_v38, %v601_v42 }
 0x53f   :  { %626 = vrot.lane.b32.xlu2 %v624_v44, %s1707_s8 }
 0x544   :  { %v60_v54 = vpop.permute.xlu1 %59 }
 0x545   :  { %vm76_vm7 = vcmp.eq.s32.totalorder %v1926_v48, %v60_v54 }
 0x547   :  { %91 = vperm.xlu2 %1565, %v42_v45  }
 0x54f   :  { %1568 = vset.pattern.permute.xlu2 %v1704_v0 }
 0x599   :  { %v627_v29 = vpop.permute.xlu2 %626 }
 0x59a   :  { %v2046_v47 = vadd.f32 %v627_v29, %v619_v46 }
 0x59c   :  { %1603 = vtanh.f32 %v2046_v47 }
 0x59d   :  { %1605 = vpow2.f32 %v1528_v50 }
 0x5a1   :  { %v92_v55 = vpop.permute.xlu2 %91 }
 0x5a2   :  { %v1604_v49 = vpop.eup %1603  ;;  %vm108_vm8 = vcmp.eq.s32.totalorder %v1926_v48, %v92_v55 }
 0x5a3   :  { %632 = vrot.lane.b32.xlu0 %v1604_v49, %s1707_s8  ;;  %v1606_v51 = vpop.eup %1605  ;;  %vm116_vm9 = vmor %vm76_vm7, %vm108_vm8 }
 0x5a4   :  { %v587_v53 = vadd.f32 1.0, %v1606_v51  ;;  %v1496_v41 = vsel %vm116_vm9, 1.0, %v1706_v43 }
 0x5a5   :  { %1505 = vmatmul.msk.f32.gmra.mxu0 %vm169_vm3, %v1496_v41  ;;  %1514 = vmatmul.msk.f32.gmra.mxu1 %vm169_vm3, %v1496_v41 }
 0x5a6   :  { %1607 = vrcp.f32 %v587_v53  ;;  %v614_v63 = vand.u32 2147483648, %v587_v53  ;;  %vm608_vm11 = vweird.f32 %v587_v53  ;;  %v612_v62 = vand.u32 2147483647, %v587_v53 }
 0x5a8   :  { %v615_v3 = vor.u32 1.1754944e-38, %v614_v63  ;;  %vm613_vm0 = vcmp.eq.f32.partialorder %v612_v62, 8.507059e+37 }
 0x5ac   :  { %v1608_v56 = vpop.eup %1607 }
 0x5ad   :  { %v604_v57 = vmul.f32 %v1608_v56, %v587_v53  ;;  %vm609_vm10 = vweird.f32 %v1608_v56 }
 0x5ae   :  { %vm610_vm12 = vmor %vm608_vm11, %vm609_vm10 }
 0x5af   :  { %v605_v59 = vsub.f32 1.0, %v604_v57 }
 0x5b1   :  { %v606_v60 = vmul.f32 %v1608_v56, %v605_v59 }
 0x5b3   :  { %v607_v61 = vadd.f32 %v1608_v56, %v606_v60 }
 0x5b5   :  { %v611_v2 = vsel %vm610_vm12, %v1608_v56, %v607_v61 }
 0x5b6   :  { %v616_v4 = vsel %vm613_vm0, %v615_v3, %v611_v2 }
 0x615   :  { %v633_v5 = vpop.permute.xlu0 %632 }
 0x616   :  { %v635_v6 = vmul.f32 %v633_v5, %v616_v4 }
 0x618   :  { %637 = vst.msk [vmem:[#allocation3 + $0x10] sm:$0xff] %vm419_vm13, %v635_v6  ;;  %1529 = vmatmul.msk.f32.vlgmr.msrb.gmra.mxu2 %vm317_vm14, %v635_v6  ;;  %1530 = vmatmul.msk.f32.vlgmr.msrb.gmra.mxu3 %vm317_vm14, %v635_v6 }
 0x619   :  { %639 = vst.msk [vmem:[#allocation3 + $0x28] sm:$0xff] %vm422_vm15, %v635_v6  ;;  %974 = vmatpush.msrb.mxu2 %v1771_v9  ;;  %994 = vmatpush.msrb.mxu3 %v1773_v10 }
 0x61b   :  { %975 = vmatpush.msrb.mxu2 %v1779_v12  ;;  %995 = vmatpush.msrb.mxu3 %v1781_v13 }
 0x61d   :  { %976 = vmatpush.msrb.mxu2 %v1787_v15  ;;  %996 = vmatpush.msrb.mxu3 %v1801_v19 }
 0x61f   :  { %977 = vmatpush.msrb.mxu2 %v1807_v21  ;;  %997 = vmatpush.msrb.mxu3 %v1812_v23 }
 0x621   :  { %978 = vmatpush.msrb.mxu2 %v1826_v27  ;;  %998 = vmatpush.msrb.mxu3 %v1828_v28 }
 0x622   :  { %v268_v9 = vpop.f32.mrf.mxu1  ;;  %v227_v19 = vpop.f32.mrf.mxu0 }
 0x623   :  { %979 = vmatpush.msrb.mxu2 %v1838_v31  ;;  %999 = vmatpush.msrb.mxu3 %v1840_v32  ;;  %v269_v10 = vadd.f32 %v268_v9, %v1956_v52  ;;  %v228_v21 = vadd.f32 %v227_v19, %v1960_v58  ;;  %v44_v9 = vld [vmem:[%s2400_s0 + $0x28] sm:$0xff]  ;;  %v46_v19 = vld [vmem:[%s2400_s0 + $0x38] sm:$0xff] }
 0x625   :  { %980 = vmatpush.msrb.mxu2 %v1848_v35  ;;  %1000 = vmatpush.msrb.mxu3 %v1850_v36  ;;  %v43_v35 = vld [vmem:[%s2400_s0 + $0x20] sm:$0xff] }
 0x627   :  { %981 = vmatpush.msrb.mxu2 %v1860_v39  ;;  %1001 = vmatpush.msrb.mxu3 %v1862_v40 }
 0x69b   :  { %v683_v12 = vpop.f32.mrf.mxu3  ;;  %v663_v23 = vpop.f32.mrf.mxu2 }
 0x69c   :  { %v687_v13 = vadd.f32 %v683_v12, %v269_v10  ;;  %v686_v27 = vadd.f32 %v663_v23, %v228_v21  ;;  %v45_v12 = vld [vmem:[%s2400_s0 + $0x30] sm:$0xff] }
 0x69e   :  { %1609 = vtanh.f32 %v687_v13  ;;  %v1531_v28 = vmul.f32 -1.442695, %v686_v27  ;;  %v1532_v33 = vmul.f32 -1.442695, %v687_v13 }
 0x6a0   :  { %1611 = vpow2.f32 %v1531_v28 }
 0x6a4   :  { %v1610_v15 = vpop.eup %1609 }
 0x6a5   :  { %729 = vrot.lane.b32.xlu0 %v1610_v15, %s1707_s8 }
 0x6a6   :  { %v1612_v31 = vpop.eup %1611 }
 0x6a7   :  { %v694_v32 = vadd.f32 1.0, %v1612_v31 }
 0x6a9   :  { %1613 = vrcp.f32 %v694_v32  ;;  %v707_v11 = vand.u32 2147483648, %v694_v32  ;;  %vm701_vm2 = vweird.f32 %v694_v32  ;;  %v705_v14 = vand.u32 2147483647, %v694_v32 }
 0x6ab   :  { %v708_v17 = vor.u32 1.1754944e-38, %v707_v11  ;;  %vm706_vm5 = vcmp.eq.f32.partialorder %v705_v14, 8.507059e+37 }
 0x6ad   :  { %62 = vperm.xlu0 %1566, %v43_v35  }
 0x6af   :  { %v1614_v36 = vpop.eup %1613 }
 0x6b0   :  { %v697_v39 = vmul.f32 %v1614_v36, %v694_v32  ;;  %vm702_vm1 = vweird.f32 %v1614_v36 }
 0x6b1   :  { %vm703_vm4 = vmor %vm701_vm2, %vm702_vm1 }
 0x6b2   :  { %v698_v40 = vsub.f32 1.0, %v697_v39 }
 0x6b4   :  { %v699_v7 = vmul.f32 %v1614_v36, %v698_v40 }
 0x6b5   :  { %1569 = vset.pattern.permute.xlu0 %v1705_v1 }
 0x6b6   :  { %v700_v8 = vadd.f32 %v1614_v36, %v699_v7  ;;  %97 = vperm.xlu0 %1569, %v44_v9  }
 0x6b8   :  { %v704_v16 = vsel %vm703_vm4, %v1614_v36, %v700_v8 }
 0x6b9   :  { %v709_v20 = vsel %vm706_vm5, %v708_v17, %v704_v16 }
 0x6ba   :  { %v727_v24 = vmul.f32 %v709_v20, %v2046_v47 }
 0x717   :  { %v730_v18 = vpop.permute.xlu0 %729 }
 0x718   :  { %v732_v22 = vmul.f32 %v730_v18, %v709_v20 }
 0x71a   :  { %734 = vrot.lane.b32.xlu1 %v732_v22, %s1707_s8 }
 0x71f   :  { %v63_v38 = vpop.permute.xlu0 %62 }
 0x720   :  { %vm77_vm6 = vcmp.eq.s32.totalorder %v1926_v48, %v63_v38 }
 0x722   :  { %94 = vperm.xlu1 %1567, %v43_v35  }
 0x728   :  { %v98_v39 = vpop.permute.xlu0 %97 }
 0x729   :  { %vm110_vm5 = vcmp.eq.s32.totalorder %v1926_v48, %v98_v39 }
 0x72a   :  { %1570 = vset.pattern.permute.xlu1 %v1704_v0 }
 0x78c   :  { %v735_v25 = vpop.permute.xlu1 %734 }
 0x78d   :  { %v2085_v26 = vadd.f32 %v735_v25, %v727_v24 }
 0x78f   :  { %1615 = vtanh.f32 %v2085_v26 }
 0x790   :  { %1617 = vpow2.f32 %v1532_v33 }
 0x794   :  { %v95_v42 = vpop.permute.xlu1 %94 }
 0x795   :  { %v1616_v30 = vpop.eup %1615  ;;  %vm109_vm7 = vcmp.eq.s32.totalorder %v1926_v48, %v95_v42 }
 0x796   :  { %740 = vrot.lane.b32.xlu2 %v1616_v30, %s1707_s8  ;;  %v1618_v34 = vpop.eup %1617  ;;  %vm117_vm8 = vmor %vm77_vm6, %vm109_vm7 }
 0x797   :  { %v695_v37 = vadd.f32 1.0, %v1618_v34  ;;  %v1497_v0 = vsel %vm117_vm8, 1.0, %v1706_v43 }
 0x798   :  { %1506 = vmatmul.msk.f32.gmra.mxu0 %vm169_vm3, %v1497_v0  ;;  %1515 = vmatmul.msk.f32.gmra.mxu1 %vm169_vm3, %v1497_v0 }
 0x799   :  { %1619 = vrcp.f32 %v695_v37  ;;  %v722_v49 = vand.u32 2147483648, %v695_v37  ;;  %vm716_vm10 = vweird.f32 %v695_v37  ;;  %v720_v50 = vand.u32 2147483647, %v695_v37 }
 0x79b   :  { %v723_v53 = vor.u32 1.1754944e-38, %v722_v49  ;;  %vm721_vm12 = vcmp.eq.f32.partialorder %v720_v50, 8.507059e+37 }
 0x79f   :  { %v1620_v44 = vpop.eup %1619 }
 0x7a0   :  { %v712_v45 = vmul.f32 %v1620_v44, %v695_v37  ;;  %vm717_vm9 = vweird.f32 %v1620_v44 }
 0x7a1   :  { %vm718_vm11 = vmor %vm716_vm10, %vm717_vm9 }
 0x7a2   :  { %v713_v46 = vsub.f32 1.0, %v712_v45 }
 0x7a4   :  { %v714_v29 = vmul.f32 %v1620_v44, %v713_v46 }
 0x7a6   :  { %v715_v47 = vadd.f32 %v1620_v44, %v714_v29 }
 0x7a8   :  { %v719_v51 = vsel %vm718_vm11, %v1620_v44, %v715_v47 }
 0x7a9   :  { %v724_v54 = vsel %vm721_vm12, %v723_v53, %v719_v51 }
 0x7f0   :  { %v741_v55 = vpop.permute.xlu2 %740 }
 0x7f1   :  { %v743_v41 = vmul.f32 %v741_v55, %v724_v54 }
 0x7f3   :  { %745 = vst.msk [vmem:[#allocation3 + $0x18] sm:$0xff] %vm419_vm13, %v743_v41  ;;  %1533 = vmatmul.msk.f32.vlgmr.msra.gmra.mxu2 %vm317_vm14, %v743_v41  ;;  %1534 = vmatmul.msk.f32.vlgmr.msra.gmra.mxu3 %vm317_vm14, %v743_v41 }
 0x7f4   :  { %747 = vst.msk [vmem:[#allocation3 + $0x20] sm:$0xff] %vm422_vm15, %v743_v41 }
 0x815   :  { %v271_v56 = vpop.f32.mrf.mxu1  ;;  %v230_v63 = vpop.f32.mrf.mxu0 }
 0x816   :  { %v272_v57 = vadd.f32 %v271_v56, %v1956_v52  ;;  %v231_v62 = vadd.f32 %v230_v63, %v1960_v58 }
 0x876   :  { %v791_v59 = vpop.f32.mrf.mxu3  ;;  %v771_v2 = vpop.f32.mrf.mxu2 }
 0x877   :  { %v2099_v60 = vadd.f32 %v791_v59, %v272_v57  ;;  %v794_v3 = vadd.f32 %v771_v2, %v231_v62 }
 0x879   :  { %1621 = vtanh.f32 %v2099_v60  ;;  %v1535_v4 = vmul.f32 -1.442695, %v794_v3 }
 0x87b   :  { %1623 = vpow2.f32 %v1535_v4 }
 0x87f   :  { %v1622_v61 = vpop.eup %1621 }
 0x880   :  { %837 = vrot.lane.b32.xlu2 %v1622_v61, %s1707_s8 }
 0x881   :  { %v1624_v5 = vpop.eup %1623 }
 0x882   :  { %v802_v6 = vadd.f32 1.0, %v1624_v5 }
 0x884   :  { %1625 = vrcp.f32 %v802_v6  ;;  %v815_v27 = vand.u32 2147483648, %v802_v6  ;;  %vm809_vm1 = vweird.f32 %v802_v6  ;;  %v813_v28 = vand.u32 2147483647, %v802_v6 }
 0x886   :  { %v816_v32 = vor.u32 1.1754944e-38, %v815_v27  ;;  %vm814_vm4 = vcmp.eq.f32.partialorder %v813_v28, 8.507059e+37 }
 0x888   :  { %65 = vperm.xlu2 %1568, %v44_v9  }
 0x88a   :  { %v1626_v10 = vpop.eup %1625 }
 0x88b   :  { %v805_v13 = vmul.f32 %v1626_v10, %v802_v6  ;;  %vm810_vm0 = vweird.f32 %v1626_v10 }
 0x88c   :  { %vm811_vm2 = vmor %vm809_vm1, %vm810_vm0 }
 0x88d   :  { %v806_v15 = vsub.f32 1.0, %v805_v13 }
 0x88f   :  { %v807_v21 = vmul.f32 %v1626_v10, %v806_v15 }
 0x890   :  { %1571 = vset.pattern.permute.xlu2 %v1705_v1 }
 0x891   :  { %100 = vperm.xlu2 %1571, %v45_v12   ;;  %v808_v23 = vadd.f32 %v1626_v10, %v807_v21 }
 0x893   :  { %v812_v31 = vsel %vm811_vm2, %v1626_v10, %v808_v23 }
 0x894   :  { %v817_v1 = vsel %vm814_vm4, %v816_v32, %v812_v31 }
 0x895   :  { %v835_v8 = vmul.f32 %v817_v1, %v2085_v26  ;;  %v1536_v26 = vmul.f32 -1.442695, %v2099_v60 }
 0x899   :  { %103 = vperm.xlu2 %1571, %v46_v19  }
 0x8da   :  { %v838_v35 = vpop.permute.xlu2 %837 }
 0x8db   :  { %v840_v36 = vmul.f32 %v838_v35, %v817_v1 }
 0x8dd   :  { %842 = vrot.lane.b32.xlu1 %v840_v36, %s1707_s8 }
 0x8e2   :  { %v66_v40 = vpop.permute.xlu2 %65 }
 0x8e3   :  { %vm78_vm6 = vcmp.eq.s32.totalorder %v1926_v48, %v66_v40 }
 0x8e4   :  { %vm118_vm7 = vmor %vm78_vm6, %vm110_vm5 }
 0x8e5   :  { %68 = vperm.xlu1 %1570, %v45_v12   ;;  %v1498_v7 = vsel %vm118_vm7, 1.0, %v1706_v43 }
 0x8e6   :  { %1507 = vmatmul.msk.f32.gmra.mxu0 %vm169_vm3, %v1498_v7  ;;  %1516 = vmatmul.msk.f32.gmra.mxu1 %vm169_vm3, %v1498_v7 }
 0x8eb   :  { %v101_v16 = vpop.permute.xlu2 %100 }
 0x8ec   :  { %vm111_vm8 = vcmp.eq.s32.totalorder %v1926_v48, %v101_v16 }
 0x8ed   :  { %71 = vperm.xlu1 %1570, %v46_v19  }
 0x8f3   :  { %v104_v22 = vpop.permute.xlu2 %103 }
 0x8f4   :  { %vm112_vm11 = vcmp.eq.s32.totalorder %v1926_v48, %v104_v22 }
 0x94f   :  { %v843_v11 = vpop.permute.xlu1 %842 }
 0x950   :  { %v2121_v14 = vadd.f32 %v843_v11, %v835_v8 }
 0x952   :  { %1627 = vtanh.f32 %v2121_v14 }
 0x953   :  { %1629 = vpow2.f32 %v1536_v26 }
 0x957   :  { %v69_v17 = vpop.permute.xlu1 %68 }
 0x958   :  { %v1628_v18 = vpop.eup %1627  ;;  %vm79_vm9 = vcmp.eq.s32.totalorder %v1926_v48, %v69_v17 }
 0x959   :  { %848 = vrot.lane.b32.xlu0 %v1628_v18, %s1707_s8  ;;  %vm119_vm10 = vmor %vm79_vm9, %vm111_vm8  ;;  %v1630_v30 = vpop.eup %1629 }
 0x95a   :  { %v1499_v20 = vsel %vm119_vm10, 1.0, %v1706_v43  ;;  %v803_v33 = vadd.f32 1.0, %v1630_v30 }
 0x95b   :  { %1508 = vmatmul.msk.f32.gmra.mxu0 %vm169_vm3, %v1499_v20  ;;  %1517 = vmatmul.msk.f32.gmra.mxu1 %vm169_vm3, %v1499_v20 }
 0x95c   :  { %1631 = vrcp.f32 %v803_v33  ;;  %vm824_vm2 = vweird.f32 %v803_v33  ;;  %v828_v44 = vand.u32 2147483647, %v803_v33 }
 0x95e   :  { %vm829_vm5 = vcmp.eq.f32.partialorder %v828_v44, 8.507059e+37 }
 0x95f   :  { %v72_v24 = vpop.permute.xlu1 %71 }
 0x960   :  { %vm80_vm12 = vcmp.eq.s32.totalorder %v1926_v48, %v72_v24  ;;  %v830_v48 = vand.u32 2147483648, %v803_v33 }
 0x961   :  { %vm120_vm0 = vmor %vm80_vm12, %vm112_vm11 }
 0x962   :  { %v1500_v25 = vsel %vm120_vm0, 1.0, %v1706_v43  ;;  %v1632_v34 = vpop.eup %1631  ;;  %v831_v45 = vor.u32 1.1754944e-38, %v830_v48 }
 0x963   :  { %1509 = vmatmul.msk.f32.gmra.mxu0 %vm169_vm3, %v1500_v25  ;;  %1518 = vmatmul.msk.f32.gmra.mxu1 %vm169_vm3, %v1500_v25  ;;  %v820_v37 = vmul.f32 %v1632_v34, %v803_v33  ;;  %vm825_vm1 = vweird.f32 %v1632_v34  ;;  %v274_v49 = vpop.f32.mrf.mxu1  ;;  %v233_v56 = vpop.f32.mrf.mxu0 }
 0x964   :  { %vm826_vm4 = vmor %vm824_vm2, %vm825_vm1  ;;  %v275_v53 = vadd.f32 %v274_v49, %v1956_v52  ;;  %v234_v61 = vadd.f32 %v233_v56, %v1960_v58 }
 0x965   :  { %v821_v38 = vsub.f32 1.0, %v820_v37 }
 0x967   :  { %v822_v42 = vmul.f32 %v1632_v34, %v821_v38 }
 0x969   :  { %v823_v0 = vadd.f32 %v1632_v34, %v822_v42 }
 0x96b   :  { %v827_v43 = vsel %vm826_vm4, %v1632_v34, %v823_v0 }
 0x96c   :  { %v832_v46 = vsel %vm829_vm5, %v831_v45, %v827_v43 }
 0x9cb   :  { %v849_v29 = vpop.permute.xlu0 %848 }
 0x9cc   :  { %v851_v47 = vmul.f32 %v849_v29, %v832_v46 }
 0x9ce   :  { %852 = vst.msk [vmem:[#allocation3 + $0x20] sm:$0xff] %vm419_vm13, %v851_v47  ;;  %1537 = vmatmul.msk.f32.vlgmr.msrb.gmra.mxu0 %vm317_vm14, %v851_v47  ;;  %1538 = vmatmul.msk.f32.vlgmr.msrb.gmra.mxu1 %vm317_vm14, %v851_v47 }
 0x9cf   :  { %853 = vst.msk [vmem:[#allocation3 + $0x18] sm:$0xff] %vm422_vm15, %v851_v47 }
 0x9d8   :  { %v2140_v50 = vpop.f32.mrf.mxu1  ;;  %v2146_v57 = vpop.f32.mrf.mxu0 }
 0x9d9   :  { %v278_v26 = vadd.f32 %v2140_v50, %v1956_v52  ;;  %v237_v38 = vadd.f32 %v2146_v57, %v1960_v58 }
 0x9e0   :  { %v2142_v51 = vpop.f32.mrf.mxu1  ;;  %v2148_v59 = vpop.f32.mrf.mxu0 }
 0xa4b   :  { %v897_v54 = vpop.f32.mrf.mxu1  ;;  %v877_v60 = vpop.f32.mrf.mxu0 }
 0xa4c   :  { %v901_v55 = vadd.f32 %v897_v54, %v275_v53  ;;  %v900_v63 = vadd.f32 %v877_v60, %v234_v61 }
 0xa4e   :  { %1633 = vtanh.f32 %v901_v55  ;;  %v1539_v62 = vmul.f32 -1.442695, %v900_v63  ;;  %v1540_v1 = vmul.f32 -1.442695, %v901_v55 }
 0xa50   :  { %1635 = vpow2.f32 %v1539_v62 }
 0xa54   :  { %v1634_v41 = vpop.eup %1633 }
 0xa55   :  { %943 = vrot.lane.b32.xlu1 %v1634_v41, %s1707_s8 }
 0xa56   :  { %v1636_v2 = vpop.eup %1635 }
 0xa57   :  { %v908_v3 = vadd.f32 1.0, %v1636_v2 }
 0xa59   :  { %1637 = vrcp.f32 %v908_v3  ;;  %v921_v12 = vand.u32 2147483648, %v908_v3  ;;  %vm915_vm6 = vweird.f32 %v908_v3  ;;  %v919_v13 = vand.u32 2147483647, %v908_v3 }
 0xa5b   :  { %v922_v19 = vor.u32 1.1754944e-38, %v921_v12  ;;  %vm920_vm8 = vcmp.eq.f32.partialorder %v919_v13, 8.507059e+37 }
 0xa5f   :  { %v1638_v4 = vpop.eup %1637 }
 0xa60   :  { %v911_v5 = vmul.f32 %v1638_v4, %v908_v3  ;;  %vm916_vm3 = vweird.f32 %v1638_v4 }
 0xa61   :  { %vm917_vm7 = vmor %vm915_vm6, %vm916_vm3 }
 0xa62   :  { %v912_v6 = vsub.f32 1.0, %v911_v5 }
 0xa64   :  { %v913_v9 = vmul.f32 %v1638_v4, %v912_v6 }
 0xa66   :  { %v914_v10 = vadd.f32 %v1638_v4, %v913_v9 }
 0xa68   :  { %v918_v15 = vsel %vm917_vm7, %v1638_v4, %v914_v10 }
 0xa69   :  { %v923_v23 = vsel %vm920_vm8, %v922_v19, %v918_v15 }
 0xa6a   :  { %v941_v28 = vmul.f32 %v923_v23, %v2121_v14 }
 0xac7   :  { %v944_v21 = vpop.permute.xlu1 %943 }
 0xac8   :  { %v946_v27 = vmul.f32 %v944_v21, %v923_v23 }
 0xaca   :  { %948 = vrot.lane.b32.xlu2 %v946_v27, %s1707_s8 }
 0xb24   :  { %v949_v31 = vpop.permute.xlu2 %948 }
 0xb25   :  { %v951_v32 = vadd.f32 %v949_v31, %v941_v28  ;;  %v281_v28 = vadd.f32 %v2142_v51, %v1956_v52 }
 0xb27   :  { %1639 = vtanh.f32 %v951_v32 }
 0xb28   :  { %1641 = vpow2.f32 %v1540_v1 }
 0xb2d   :  { %v1640_v35 = vpop.eup %1639 }
 0xb2e   :  { %954 = vrot.lane.b32.xlu0 %v1640_v35, %s1707_s8  ;;  %v1642_v36 = vpop.eup %1641 }
 0xb2f   :  { %v909_v39 = vadd.f32 1.0, %v1642_v36  ;;  %v240_v36 = vadd.f32 %v2148_v59, %v1960_v58 }
 0xb31   :  { %1643 = vrcp.f32 %v909_v39  ;;  %v936_v17 = vand.u32 2147483648, %v909_v39  ;;  %vm930_vm10 = vweird.f32 %v909_v39  ;;  %v934_v14 = vand.u32 2147483647, %v909_v39 }
 0xb33   :  { %v937_v20 = vor.u32 1.1754944e-38, %v936_v17  ;;  %vm935_vm12 = vcmp.eq.f32.partialorder %v934_v14, 8.507059e+37 }
 0xb37   :  { %v1644_v40 = vpop.eup %1643 }
 0xb38   :  { %v926_v7 = vmul.f32 %v1644_v40, %v909_v39  ;;  %vm931_vm9 = vweird.f32 %v1644_v40 }
 0xb39   :  { %vm932_vm11 = vmor %vm930_vm10, %vm931_vm9 }
 0xb3a   :  { %v927_v8 = vsub.f32 1.0, %v926_v7 }
 0xb3c   :  { %v928_v11 = vmul.f32 %v1644_v40, %v927_v8 }
 0xb3e   :  { %v929_v16 = vadd.f32 %v1644_v40, %v928_v11 }
 0xb40   :  { %v933_v18 = vsel %vm932_vm11, %v1644_v40, %v929_v16 }
 0xb41   :  { %v938_v22 = vsel %vm935_vm12, %v937_v20, %v933_v18 }
 0xba0   :  { %v955_v24 = vpop.permute.xlu0 %954 }
 0xba1   :  { %v957_v25 = vmul.f32 %v955_v24, %v938_v22 }
 0xba3   :  { %958 = vst.msk [vmem:[#allocation3 + $0x28] sm:$0xff] %vm419_vm13, %v957_v25  ;;  %1541 = vmatmul.msk.f32.vlgmr.msrb.gmra.mxu2 %vm317_vm14, %v957_v25  ;;  %1542 = vmatmul.msk.f32.vlgmr.msrb.gmra.mxu3 %vm317_vm14, %v957_v25 }
 0xba4   :  { %959 = vst.msk [vmem:[#allocation3 + $0x10] sm:$0xff] %vm422_vm15, %v957_v25 }
 0xc26   :  { %v1003_v30 = vpop.f32.mrf.mxu3  ;;  %v983_v37 = vpop.f32.mrf.mxu2 }
 0xc27   :  { %v1007_v33 = vadd.f32 %v1003_v30, %v278_v26  ;;  %v1006_v42 = vadd.f32 %v983_v37, %v237_v38 }
 0xc29   :  { %1645 = vtanh.f32 %v1007_v33  ;;  %v1543_v0 = vmul.f32 -1.442695, %v1006_v42  ;;  %v1544_v62 = vmul.f32 -1.442695, %v1007_v33  ;;  %v1411_v42 = vld [vmem:[%s2404_s4 + $0xb8] sm:$0xff] }
 0xc2a   :  { %1444 = vmatpush.msrb.mxu0 %v1411_v42  ;;  %v1308_v42 = vld [vmem:[%s2404_s4 + $0x8] sm:$0xff] }
 0xc2b   :  { %1647 = vpow2.f32 %v1543_v0  ;;  %v1410_v0 = vld [vmem:[%s2404_s4 + $0xb0] sm:$0xff] }
 0xc2c   :  { %1445 = vmatpush.msrb.mxu0 %v1410_v0 }
 0xc2f   :  { %v1646_v34 = vpop.eup %1645 }
 0xc30   :  { %1049 = vrot.lane.b32.xlu1 %v1646_v34, %s1707_s8 }
 0xc31   :  { %v1648_v48 = vpop.eup %1647 }
 0xc32   :  { %v1014_v44 = vadd.f32 1.0, %v1648_v48  ;;  %v1409_v48 = vld [vmem:[%s2404_s4 + $0xa8] sm:$0xff] }
 0xc33   :  { %1446 = vmatpush.msrb.mxu0 %v1409_v48 }
 0xc34   :  { %1649 = vrcp.f32 %v1014_v44  ;;  %v1027_v49 = vand.u32 2147483648, %v1014_v44  ;;  %vm1021_vm1 = vweird.f32 %v1014_v44  ;;  %v1025_v50 = vand.u32 2147483647, %v1014_v44 }
 0xc36   :  { %v1028_v54 = vor.u32 1.1754944e-38, %v1027_v49  ;;  %vm1026_vm4 = vcmp.eq.f32.partialorder %v1025_v50, 8.507059e+37  ;;  %v1313_v49 = vld [vmem:[%s2404_s4 + $0x30] sm:$0xff] }
 0xc3a   :  { %v1650_v43 = vpop.eup %1649 }
 0xc3b   :  { %v1017_v45 = vmul.f32 %v1650_v43, %v1014_v44  ;;  %vm1022_vm0 = vweird.f32 %v1650_v43  ;;  %v1322_v44 = vld [vmem:[%s2404_s4 + $0x78] sm:$0xff] }
 0xc3c   :  { %vm1023_vm2 = vmor %vm1021_vm1, %vm1022_vm0  ;;  %1355 = vmatpush.msra.mxu2 %v1322_v44 }
 0xc3d   :  { %v1018_v46 = vsub.f32 1.0, %v1017_v45  ;;  %v1708_v45 = vmov 8.0  }
 0xc3f   :  { %v1019_v29 = vmul.f32 %v1650_v43, %v1018_v46  ;;  %v1314_v46 = vld [vmem:[%s2404_s4 + $0x38] sm:$0xff] }
 0xc40   :  { %1392 = vmatpush.msra.mxu3 %v1314_v46 }
 0xc41   :  { %v1020_v47 = vadd.f32 %v1650_v43, %v1019_v29  ;;  %v1408_v29 = vld [vmem:[%s2404_s4 + $0xa0] sm:$0xff] }
 0xc42   :  { %1393 = vmatpush.msra.mxu3 %v1313_v49  ;;  %1447 = vmatpush.msrb.mxu0 %v1408_v29 }
 0xc43   :  { %v1024_v53 = vsel %vm1023_vm2, %v1650_v43, %v1020_v47  ;;  %v1321_v43 = vld [vmem:[%s2404_s4 + $0x70] sm:$0xff]  ;;  %v1320_v47 = vld [vmem:[%s2404_s4 + $0x68] sm:$0xff] }
 0xc44   :  { %v1029_v41 = vsel %vm1026_vm4, %v1028_v54, %v1024_v53  ;;  %1356 = vmatpush.msra.mxu2 %v1321_v43  ;;  %v1407_v53 = vld [vmem:[%s2404_s4 + $0x98] sm:$0xff] }
 0xc45   :  { %v1047_v57 = vmul.f32 %v1029_v41, %v951_v32  ;;  %1448 = vmatpush.msrb.mxu0 %v1407_v53 }
 0xc46   :  { %1357 = vmatpush.msra.mxu2 %v1320_v47 }
 0xca2   :  { %v1050_v55 = vpop.permute.xlu1 %1049 }
 0xca3   :  { %v1052_v56 = vmul.f32 %v1050_v55, %v1029_v41  ;;  %v1406_v55 = vld [vmem:[%s2404_s4 + $0x90] sm:$0xff]  ;;  %v2216_v41 = vld [vmem:[#allocation3 + $0x20] sm:$0xff] }
 0xca4   :  { %1449 = vmatpush.msrb.mxu0 %v1406_v55 }
 0xca5   :  { %1054 = vrot.lane.b32.xlu2 %v1052_v56, %s1707_s8 }
 0xcff   :  { %v1055_v60 = vpop.permute.xlu2 %1054 }
 0xd00   :  { %v1057_v61 = vadd.f32 %v1055_v60, %v1047_v57  ;;  %v1405_v57 = vld [vmem:[%s2404_s4 + $0x88] sm:$0xff]  ;;  %v2223_v60 = vld [vmem:[#allocation3 + $0x18] sm:$0xff] }
 0xd01   :  { %1450 = vmatpush.msrb.mxu0 %v1405_v57 }
 0xd02   :  { %1651 = vtanh.f32 %v1057_v61 }
 0xd03   :  { %1653 = vpow2.f32 %v1544_v62  ;;  %v1404_v62 = vld [vmem:[%s2404_s4 + $0x80] sm:$0xff] }
 0xd04   :  { %1451 = vmatpush.msrb.mxu0 %v1404_v62  ;;  %v1307_v62 = vld [vmem:[%s2404_s4] sm:$0xff] }
 0xd08   :  { %v1652_v63 = vpop.eup %1651 }
 0xd09   :  { %1060 = vrot.lane.b32.xlu0 %v1652_v63, %s1707_s8  ;;  %v1654_v2 = vpop.eup %1653 }
 0xd0a   :  { %v1015_v3 = vadd.f32 1.0, %v1654_v2 }
 0xd0c   :  { %1655 = vrcp.f32 %v1015_v3  ;;  %v1042_v12 = vand.u32 2147483648, %v1015_v3  ;;  %vm1036_vm3 = vweird.f32 %v1015_v3  ;;  %v1040_v13 = vand.u32 2147483647, %v1015_v3 }
 0xd0e   :  { %v1043_v19 = vor.u32 1.1754944e-38, %v1042_v12  ;;  %vm1041_vm7 = vcmp.eq.f32.partialorder %v1040_v13, 8.507059e+37 }
 0xd12   :  { %v1656_v4 = vpop.eup %1655 }
 0xd13   :  { %v1032_v5 = vmul.f32 %v1656_v4, %v1015_v3  ;;  %vm1037_vm5 = vweird.f32 %v1656_v4  ;;  %v1208_v3 = vsel %vm317_vm14, %v2216_v41, 0.0 }
 0xd14   :  { %vm1038_vm6 = vmor %vm1036_vm3, %vm1037_vm5  ;;  %v1209_v13 = vrot.slane %v1208_v3, 4  ;;  %vm1335_vm5 = vcmask 1043459   ;;  %vm1337_vm3 = vcmask 1044484  }
 0xd15   :  { %v1033_v6 = vsub.f32 1.0, %v1032_v5 }
 0xd17   :  { %v1034_v9 = vmul.f32 %v1656_v4, %v1033_v6  ;;  %v2235_v6 = vld [vmem:[#allocation3 + $0x10] sm:$0xff] }
 0xd19   :  { %v1035_v10 = vadd.f32 %v1656_v4, %v1034_v9  ;;  %v2237_v9 = vld [vmem:[#allocation3 + $0x28] sm:$0xff] }
 0xd1b   :  { %v1039_v15 = vsel %vm1038_vm6, %v1656_v4, %v1035_v10  ;;  %v1272_v4 = vsel %vm317_vm14, %v2223_v60, -inf  ;;  %v1201_v10 = vsel %vm317_vm14, %v2223_v60, 0.0  ;;  %vm1339_vm6 = vcmask 1045509  }
 0xd1c   :  { %v1044_v21 = vsel %vm1041_vm7, %v1043_v19, %v1039_v15  ;;  %v1273_v15 = vrot.slane %v1272_v4, 4  ;;  %vm1341_vm7 = vcmask 1046534  }
 0xd7b   :  { %v1061_v23 = vpop.permute.xlu0 %1060 }
 0xd7c   :  { %v1063_v27 = vmul.f32 %v1061_v23, %v1044_v21  ;;  %v1194_v21 = vsel %vm317_vm14, %v2235_v6, 0.0  ;;  %v1202_v23 = vrot.slane %v1201_v10, 4 }
 0xd7e   :  { %1064 = vst.msk [vmem:[#allocation3 + $0x30] sm:$0xff] %vm419_vm13, %v1063_v27  ;;  %1545 = vmatmul.msk.f32.vlgmr.msra.gmra.mxu0 %vm317_vm14, %v1063_v27  ;;  %1546 = vmatmul.msk.f32.vlgmr.msra.gmra.mxu1 %vm317_vm14, %v1063_v27 }
 0xd7f   :  { %1065 = vst.msk [vmem:[#allocation3 + $0x8] sm:$0xff] %vm422_vm15, %v1063_v27  ;;  %v1215_v27 = vsel %vm317_vm14, %v2237_v9, 0.0 }
 0xdfb   :  { %v1109_v31 = vpop.f32.mrf.mxu1  ;;  %v1089_v1 = vpop.f32.mrf.mxu0 }
 0xdfc   :  { %v1113_v32 = vadd.f32 %v1109_v31, %v281_v28  ;;  %v1112_v39 = vadd.f32 %v1089_v1, %v240_v36  ;;  %v1319_v28 = vld [vmem:[%s2404_s4 + $0x60] sm:$0xff]  ;;  %v1312_v31 = vld [vmem:[%s2404_s4 + $0x28] sm:$0xff] }
 0xdfd   :  { %1358 = vmatpush.msra.mxu2 %v1319_v28  ;;  %1394 = vmatpush.msra.mxu3 %v1312_v31  ;;  %v1311_v1 = vld [vmem:[%s2404_s4 + $0x20] sm:$0xff] }
 0xdfe   :  { %1657 = vtanh.f32 %v1113_v32  ;;  %v1547_v40 = vmul.f32 -1.442695, %v1112_v39  ;;  %v1548_v34 = vmul.f32 -1.442695, %v1113_v32  ;;  %v1318_v32 = vld [vmem:[%s2404_s4 + $0x58] sm:$0xff]  ;;  %v2259_v39 = vld [vmem:[#allocation3 + $0x8] sm:$0xff] }
 0xdff   :  { %1359 = vmatpush.msra.mxu2 %v1318_v32  ;;  %1395 = vmatpush.msra.mxu3 %v1311_v1 }
 0xe00   :  { %1659 = vpow2.f32 %v1547_v40  ;;  %v1210_v40 = vadd.f32 %v1209_v13, %v1208_v3 }
 0xe02   :  { %v1211_v48 = vrot.slane %v1210_v40, 2 }
 0xe04   :  { %v1658_v35 = vpop.eup %1657 }
 0xe05   :  { %1155 = vrot.lane.b32.xlu1 %v1658_v35, %s1707_s8 }
 0xe06   :  { %v1660_v7 = vpop.eup %1659 }
 0xe07   :  { %v1120_v8 = vadd.f32 1.0, %v1660_v7  ;;  %v1286_v7 = vsel %vm317_vm14, %v2237_v9, -inf }
 0xe09   :  { %1661 = vrcp.f32 %v1120_v8  ;;  %v1133_v14 = vand.u32 2147483648, %v1120_v8  ;;  %vm1127_vm9 = vweird.f32 %v1120_v8  ;;  %v1131_v18 = vand.u32 2147483647, %v1120_v8 }
 0xe0b   :  { %v1134_v22 = vor.u32 1.1754944e-38, %v1133_v14  ;;  %vm1132_vm11 = vcmp.eq.f32.partialorder %v1131_v18, 8.507059e+37  ;;  %v1203_v18 = vadd.f32 %v1202_v23, %v1201_v10 }
 0xe0d   :  { %v1204_v53 = vrot.slane %v1203_v18, 2 }
 0xe0f   :  { %v1662_v11 = vpop.eup %1661 }
 0xe10   :  { %v1123_v16 = vmul.f32 %v1662_v11, %v1120_v8  ;;  %vm1128_vm8 = vweird.f32 %v1662_v11  ;;  %v1317_v8 = vld [vmem:[%s2404_s4 + $0x50] sm:$0xff] }
 0xe11   :  { %vm1129_vm10 = vmor %vm1127_vm9, %vm1128_vm8  ;;  %1360 = vmatpush.msra.mxu2 %v1317_v8  ;;  %v1425_v8 = vrot.slane %v2223_v60, 4  ;;  %vm1343_vm8 = vcmask 1047559   ;;  %vm1462_vm9 = vcmask 31744  }
 0xe12   :  { %v1124_v17 = vsub.f32 1.0, %v1123_v16  ;;  %v1274_v16 = vmax.f32 %v1272_v4, %v1273_v15 }
 0xe14   :  { %v1125_v52 = vmul.f32 %v1662_v11, %v1124_v17  ;;  %v1275_v0 = vrot.slane %v1274_v16, 2 }
 0xe16   :  { %v1126_v51 = vadd.f32 %v1662_v11, %v1125_v52  ;;  %v1195_v52 = vrot.slane %v1194_v21, 4 }
 0xe18   :  { %v1130_v20 = vsel %vm1129_vm10, %v1662_v11, %v1126_v51  ;;  %v1310_v11 = vld [vmem:[%s2404_s4 + $0x18] sm:$0xff]  ;;  %v1216_v51 = vrot.slane %v1215_v27, 4  ;;  %v1196_v43 = vadd.f32 %v1195_v52, %v1194_v21  ;;  %v2313_v21 = vmax.f32 %v1274_v16, %v1275_v0 }
 0xe19   :  { %v1135_v59 = vsel %vm1132_vm11, %v1134_v22, %v1130_v20  ;;  %v1265_v20 = vsel %vm317_vm14, %v2235_v6, -inf  ;;  %v1316_v22 = vld [vmem:[%s2404_s4 + $0x48] sm:$0xff]  ;;  %1396 = vmatpush.msra.mxu3 %v1310_v11 }
 0xe1a   :  { %v1153_v25 = vmul.f32 %v1135_v59, %v1057_v61  ;;  %v1279_v61 = vsel %vm317_vm14, %v2216_v41, -inf  ;;  %v1266_v46 = vrot.slane %v1265_v20, 4  ;;  %1361 = vmatpush.msra.mxu2 %v1316_v22  ;;  %v1277_v52 = vrot.slane %v2313_v21, 1 }
 0xe1b   :  { %v1280_v5 = vrot.slane %v1279_v61, 4 }
 0xe1c   :  { %v1267_v4 = vmax.f32 %v1265_v20, %v1266_v46 }
 0xe1d   :  { %v1281_v35 = vmax.f32 %v1279_v61, %v1280_v5  ;;  %v1197_v5 = vrot.slane %v1196_v43, 2 }
 0xe1e   :  { %v1268_v1 = vrot.slane %v1267_v4, 2 }
 0xe20   :  { %v1269_v60 = vmax.f32 %v1267_v4, %v1268_v1 }
 0xe77   :  { %v1156_v58 = vpop.permute.xlu1 %1155 }
 0xe78   :  { %v1158_v24 = vmul.f32 %v1156_v58, %v1135_v59  ;;  %v1309_v58 = vld [vmem:[%s2404_s4 + $0x10] sm:$0xff]  ;;  %v1282_v59 = vrot.slane %v1281_v35, 2 }
 0xe79   :  { %1397 = vmatpush.msra.mxu3 %v1309_v58 }
 0xe7a   :  { %1160 = vrot.lane.b32.xlu2 %v1158_v24, %s1707_s8  ;;  %v1283_v49 = vmax.f32 %v1281_v35, %v1282_v59  ;;  %v1427_v35 = vrot.slane %v2216_v41, 3  ;;  %v1429_v41 = vrot.slane %v2237_v9, 2 }
 0xe7b   :  { %1398 = vmatpush.msra.mxu3 %v1308_v42 }
 0xe7c   :  { %v1284_v23 = vrot.slane %v1283_v49, 1 }
 0xe7d   :  { %1399 = vmatpush.msra.mxu3 %v1307_v62 }
 0xed4   :  { %v1161_v26 = vpop.permute.xlu2 %1160 }
 0xed5   :  { %v1163_v30 = vadd.f32 %v1161_v26, %v1153_v25  ;;  %v2282_v25 = vld [vmem:[#allocation3 + $0x30] sm:$0xff]  ;;  %v1187_v26 = vsel %vm317_vm14, %v2259_v39, 0.0 }
 0xed6   :  { %v1188_v47 = vrot.slane %v1187_v26, 4  ;;  %v1222_v55 = vsel %vm317_vm14, %v2282_v25, 0.0  ;;  %v1293_v57 = vsel %vm317_vm14, %v2282_v25, -inf  ;;  %v1431_v22 = vrot.slane %v2282_v25, 1 }
 0xed7   :  { %1663 = vtanh.f32 %v1163_v30  ;;  %v1223_v13 = vrot.slane %v1222_v55, 4  ;;  %v1294_v15 = vrot.slane %v1293_v57, 4 }
 0xed8   :  { %1665 = vpow2.f32 %v1548_v34  ;;  %v1258_v34 = vsel %vm317_vm14, %v2259_v39, -inf }
 0xed9   :  { %v1295_v11 = vmax.f32 %v1293_v57, %v1294_v15  ;;  %v1270_v15 = vrot.slane %v1269_v60, 1 }
 0xedd   :  { %v1664_v33 = vpop.eup %1663 }
 0xede   :  { %1166 = vrot.lane.b32.xlu0 %v1664_v33, %s1707_s8  ;;  %v1666_v37 = vpop.eup %1665 }
 0xedf   :  { %v2176_v38 = vadd.f32 1.0, %v1666_v37  ;;  %v1287_v37 = vrot.slane %v1286_v7, 4 }
 0xee1   :  { %1667 = vrcp.f32 %v2176_v38  ;;  %v1148_v14 = vand.u32 2147483648, %v2176_v38  ;;  %vm1142_vm0 = vweird.f32 %v2176_v38  ;;  %v1146_v24 = vand.u32 2147483647, %v2176_v38 }
 0xee2   :  { %1669 = vrcp.f32 %v1708_v45  ;;  %v1217_v45 = vadd.f32 %v1216_v51, %v1215_v27  ;;  %v2315_v27 = vadd.f32 %v1204_v53, %v1203_v18  ;;  %v2330_v51 = vmax.f32 %v1283_v49, %v1284_v23 }
 0xee3   :  { %v1149_v29 = vor.u32 1.1754944e-38, %v1148_v14  ;;  %vm1147_vm2 = vcmp.eq.f32.partialorder %v1146_v24, 8.507059e+37  ;;  %v1423_v14 = vrot.slane %v2235_v6, 5 }
 0xee4   :  { %v1218_v10 = vrot.slane %v1217_v45, 2 }
 0xee7   :  { %v2206_v50 = vpop.eup %1667 }
 0xee8   :  { %v2211_v54 = vpop.eup %1669  ;;  %v1138_v56 = vmul.f32 %v2206_v50, %v2176_v38  ;;  %vm1143_vm12 = vweird.f32 %v2206_v50  ;;  %v1315_v38 = vld [vmem:[%s2404_s4 + $0x40] sm:$0xff] }
 0xee9   :  { %v1237_v63 = vmul.f32 8.0, %v2211_v54  ;;  %vm2289_vm1 = vmor %vm1142_vm0, %vm1143_vm12  ;;  %1362 = vmatpush.msra.mxu2 %v1315_v38  ;;  %vm1241_vm4 = vweird.f32 %v2211_v54 }
 0xeea   :  { %v1139_v2 = vsub.f32 1.0, %v1138_v56  ;;  %v1259_v56 = vrot.slane %v1258_v34, 4 }
 0xeeb   :  { %v1238_v12 = vsub.f32 1.0, %v1237_v63  ;;  %v1288_v63 = vmax.f32 %v1286_v7, %v1287_v37  ;;  %v1224_v7 = vadd.f32 %v1223_v13, %v1222_v55 }
 0xeec   :  { %v1140_v19 = vmul.f32 %v2206_v50, %v1139_v2  ;;  %v1212_v2 = vadd.f32 %v1211_v48, %v1210_v40  ;;  %v2326_v40 = vadd.f32 %v1218_v10, %v1217_v45 }
 0xeed   :  { %v1239_v36 = vmul.f32 %v2211_v54, %v1238_v12  ;;  %v1189_v12 = vadd.f32 %v1188_v47, %v1187_v26  ;;  %v1289_v28 = vrot.slane %v1288_v63, 2  ;;  %v1421_v26 = vrot.slane %v2259_v39, 6 }
 0xeee   :  { %v1141_v17 = vadd.f32 %v2206_v50, %v1140_v19  ;;  %v1260_v19 = vmax.f32 %v1258_v34, %v1259_v56  ;;  %v1213_v31 = vrot.slane %v1212_v2, 1  ;;  %v1220_v59 = vrot.slane %v2326_v40, 1 }
 0xeef   :  { %v1240_v30 = vadd.f32 %v2211_v54, %v1239_v36  ;;  %v2324_v36 = vadd.f32 %v1197_v5, %v1196_v43  ;;  %v1190_v16 = vrot.slane %v1189_v12, 2  ;;  %v2335_v18 = vmax.f32 %v1288_v63, %v1289_v28 }
 0xef0   :  { %v1145_v44 = vsel %vm2289_vm1, %v2206_v50, %v1141_v17  ;;  %v1261_v17 = vrot.slane %v1260_v19, 2  ;;  %v2337_v20 = vadd.f32 %v1213_v31, %v1212_v2  ;;  %v1225_v34 = vrot.slane %v1224_v7, 2 }
 0xef1   :  { %v1150_v50 = vsel %vm1147_vm2, %v1149_v29, %v1145_v44  ;;  %v2321_v32 = vsel %vm1241_vm4, %v2211_v54, %v1240_v30  ;;  %v1206_v54 = vrot.slane %v2315_v27, 1  ;;  %v1199_v58 = vrot.slane %v2324_v36, 1 }
 0xef2   :  { %v1296_v30 = vrot.slane %v1295_v11, 2  ;;  %v1191_v33 = vadd.f32 %v1190_v16, %v1189_v12  ;;  %v1262_v38 = vmax.f32 %v1260_v19, %v1261_v17 }
 0xef3   :  { %v1207_v16 = vadd.f32 %v1206_v54, %v2315_v27 }
 0xef4   :  { %v1192_v29 = vrot.slane %v1191_v33, 1  ;;  %v1263_v2 = vrot.slane %v1262_v38, 1  ;;  %v1297_v19 = vmax.f32 %v1295_v11, %v1296_v30  ;;  %v1271_v11 = vmax.f32 %v1269_v60, %v1270_v15 }
 0xef6   :  { %v1193_v23 = vadd.f32 %v1192_v29, %v1191_v33  ;;  %v1298_v30 = vrot.slane %v1297_v19, 1  ;;  %v1221_v33 = vadd.f32 %v1220_v59, %v2326_v40 }
 0xef8   :  { %v1244_v54 = vmul.f32 %v2321_v32, %v1193_v23  ;;  %v1299_v59 = vmax.f32 %v1297_v19, %v1298_v30 }
 0xf50   :  { %v1167_v61 = vpop.permute.xlu0 %1166 }
 0xf51   :  { %v1169_v3 = vmul.f32 %v1167_v61, %v1150_v50 }
 0xf53   :  { %1170 = vst.msk [vmem:[#allocation3 + $0x38] sm:$0xff] %vm419_vm13, %v1169_v3  ;;  %vm1331_vm13 = vcmask 1041409  }
 0xf54   :  { %1171 = vst.msk [vmem:[#allocation3] sm:$0xff] %vm422_vm15, %v1169_v3  ;;  %vm1333_vm15 = vcmask 1042434   ;;  %v1226_v3 = vadd.f32 %v1225_v34, %v1224_v7  ;;  %v1200_v7 = vadd.f32 %v1199_v58, %v2324_v36 }
 0xf56   :  { %v1227_v17 = vrot.slane %v1226_v3, 1  ;;  %v1245_v60 = vmul.f32 %v2321_v32, %v1200_v7 }
 0xf5a   :  { %v1179_v24 = vld [vmem:[#allocation3 + $0x38] sm:$0xff] }
 0xf5b   :  { %v1172_v6 = vld [vmem:[#allocation3] sm:$0xff]  ;;  %v1229_v9 = vsel %vm317_vm14, %v1179_v24, 0.0  ;;  %v1300_v37 = vsel %vm317_vm14, %v1179_v24, -inf }
 0xf5c   :  { %v1180_v25 = vsel %vm317_vm14, %v1172_v6, 0.0  ;;  %v1230_v42 = vrot.slane %v1229_v9, 4  ;;  %v1251_v0 = vsel %vm317_vm14, %v1172_v6, -inf  ;;  %v1301_v48 = vrot.slane %v1300_v37, 4 }
 0xf5d   :  { %v1181_v44 = vrot.slane %v1180_v25, 4  ;;  %v1252_v43 = vrot.slane %v1251_v0, 4  ;;  %v1420_v39 = vrot.slane %v1172_v6, 7  ;;  %v1228_v6 = vadd.f32 %v1227_v17, %v1226_v3 }
 0xf5e   :  { %v1231_v45 = vadd.f32 %v1230_v42, %v1229_v9  ;;  %v1302_v46 = vmax.f32 %v1300_v37, %v1301_v48  ;;  %v1246_v9 = vmul.f32 %v2321_v32, %v1207_v16 }
 0xf5f   :  { %v1182_v47 = vadd.f32 %v1181_v44, %v1180_v25  ;;  %v1422_v49 = vsel %vm1331_vm13, %v1421_v26, %v1420_v39  ;;  %v1253_v53 = vmax.f32 %v1251_v0, %v1252_v43  ;;  %v1247_v25 = vmul.f32 %v2321_v32, %v2337_v20 }
 0xf60   :  { %v1232_v55 = vrot.slane %v1231_v45, 2  ;;  %v1424_v56 = vsel %vm1333_vm15, %v1423_v14, %v1422_v49  ;;  %v1303_v57 = vrot.slane %v1302_v46, 2  ;;  %v1248_v44 = vmul.f32 %v2321_v32, %v1221_v33 }
 0xf61   :  { %v1426_v50 = vsel %vm1335_vm5, %v1425_v8, %v1424_v56  ;;  %v1254_v61 = vrot.slane %v1253_v53, 2  ;;  %v1183_v63 = vrot.slane %v1182_v47, 2  ;;  %v1249_v39 = vmul.f32 %v2321_v32, %v1228_v6  ;;  %v1572_v56 = vld [vmem:[%s2405_s5] ss:$0 sm:$0xff] }
 0xf62   :  { %v1428_v62 = vsel %vm1337_vm3, %v1427_v35, %v1426_v50  ;;  %v1233_v4 = vadd.f32 %v1232_v55, %v1231_v45  ;;  %v1304_v1 = vmax.f32 %v1302_v46, %v1303_v57  ;;  %v1291_v35 = vrot.slane %v2335_v18, 1 }
 0xf63   :  { %v1430_v5 = vsel %vm1339_vm6, %v1429_v41, %v1428_v62  ;;  %v1255_v10 = vmax.f32 %v1253_v53, %v1254_v61  ;;  %v1184_v12 = vadd.f32 %v1183_v63, %v1182_v47  ;;  %v1264_v41 = vmax.f32 %v1262_v38, %v1263_v2 }
 0xf64   :  { %v1432_v13 = vsel %vm1341_vm7, %v1431_v22, %v1430_v5  ;;  %v1234_v26 = vrot.slane %v1233_v4, 1  ;;  %v1305_v34 = vrot.slane %v1304_v1, 1 }
 0xf65   :  { %v1433_v28 = vsel %vm1343_vm8, %v1179_v24, %v1432_v13  ;;  %v1256_v31 = vrot.slane %v1255_v10, 1  ;;  %v1185_v8 = vrot.slane %v1184_v12, 1  ;;  %v1278_v24 = vmax.f32 %v2313_v21, %v1277_v52 }
 0xf66   :  { %1551 = vmatmul.msk.f32.vlgmr.msrb.gmra.mxu0 %vm317_vm14, %v1433_v28  ;;  %v1292_v21 = vmax.f32 %v2335_v18, %v1291_v35  ;;  %v1235_v37 = vadd.f32 %v1234_v26, %v1233_v4  ;;  %v1306_v0 = vmax.f32 %v1304_v1, %v1305_v34 }
 0xf67   :  { %v1257_v14 = vmax.f32 %v1255_v10, %v1256_v31  ;;  %v1186_v22 = vadd.f32 %v1185_v8, %v1184_v12 }
 0xf68   :  { %v1250_v46 = vmul.f32 %v2321_v32, %v1235_v37 }
 0xf69   :  { %v1332_v36 = vsel %vm1331_vm13, %v1264_v41, %v1257_v14  ;;  %v1243_v27 = vmul.f32 %v2321_v32, %v1186_v22 }
 0xf6a   :  { %v1334_v58 = vsel %vm1333_vm15, %v1271_v11, %v1332_v36 }
 0xf6b   :  { %v1336_v52 = vsel %vm1335_vm5, %v1278_v24, %v1334_v58  ;;  %v1375_v40 = vsel %vm1331_vm13, %v1244_v54, %v1243_v27 }
 0xf6c   :  { %v1338_v38 = vsel %vm1337_vm3, %v2330_v51, %v1336_v52  ;;  %v1376_v42 = vsel %vm1333_vm15, %v1245_v60, %v1375_v40 }
 0xf6d   :  { %v1340_v48 = vsel %vm1339_vm6, %v1292_v21, %v1338_v38  ;;  %v1377_v18 = vsel %vm1335_vm5, %v1246_v9, %v1376_v42 }
 0xf6e   :  { %v1342_v43 = vsel %vm1341_vm7, %v1299_v59, %v1340_v48  ;;  %v1378_v45 = vsel %vm1337_vm3, %v1247_v25, %v1377_v18 }
 0xf6f   :  { %v1344_v51 = vsel %vm1343_vm8, %v1306_v0, %v1342_v43  ;;  %v1379_v20 = vsel %vm1339_vm6, %v1248_v44, %v1378_v45 }
 0xf70   :  { %1549 = vmatmul.msk.f32.vlgmr.msra.gmra.mxu2 %vm317_vm14, %v1344_v51  ;;  %v1380_v29 = vsel %vm1341_vm7, %v1249_v39, %v1379_v20 }
 0xf71   :  { %v1381_v47 = vsel %vm1343_vm8, %v1250_v46, %v1380_v29 }
 0xf72   :  { %1550 = vmatmul.msk.f32.vlgmr.msra.gmra.mxu3 %vm317_vm14, %v1381_v47 }
 0xfe3   :  { %v1453_v57 = vpop.f32.mrf.mxu0 }
 0xff3   :  { %v1364_v49 = vpop.f32.mrf.mxu2 }
 0xff5   :  { %v1401_v53 = vpop.f32.mrf.mxu3 }
 0xff6   :  { %v1402_v55 = vadd.f32 %v1401_v53, %v1364_v49 }
 0xff8   :  { %v1456_v50 = vadd.f32 %v1453_v57, %v1402_v55 }
 0xffa   :  { %v1461_v32 = vadd.f32 %v1572_v56, %v1456_v50 }
 0xffc   :  { %v1463_v61 = vsel %vm1462_vm9, %v1461_v32, -inf }
 0xffd   :  { %1464 = vmax.xlane.f32.xlu1 %v1463_v61 }
0x1070   :  { %v1465_v63 = vpop.xlane.xlu1 %1464 }
0x1071   :  { %v1466_v62 = vsub.f32 %v1461_v32, %v1465_v63 }
0x1073   :  { %v1467_v2 = vmul.f32 1.442695, %v1466_v62 }
0x1075   :  { %1671 = vpow2.f32 %v1467_v2 }
0x107b   :  { %v1672_v3 = vpop.eup %1671 }
0x107c   :  { %v1469_v4 = vsel %vm1462_vm9, %v1672_v3, 0.0 }
0x107d   :  { %1470 = vadd.xlane.f32.xlu2 %v1469_v4 }
0x10f0   :  { %v1471_v5 = vpop.xlane.xlu2 %1470 }
0x10f1   :  { %1673 = vrcp.f32 %v1471_v5  ;;  %v1483_v15 = vand.u32 2147483648, %v1471_v5  ;;  %v1481_v23 = vand.u32 2147483647, %v1471_v5  ;;  %vm1477_vm10 = vweird.f32 %v1471_v5 }
0x10f3   :  { %v1484_v31 = vor.u32 1.1754944e-38, %v1483_v15  ;;  %vm1482_vm12 = vcmp.eq.f32.partialorder %v1481_v23, 8.507059e+37 }
0x10f7   :  { %v1674_v10 = vpop.eup %1673 }
0x10f8   :  { %v1473_v12 = vmul.f32 %v1674_v10, %v1471_v5  ;;  %vm1478_vm14 = vweird.f32 %v1674_v10 }
0x10f9   :  { %vm1479_vm11 = vmor %vm1477_vm10, %vm1478_vm14 }
0x10fa   :  { %v1474_v13 = vsub.f32 1.0, %v1473_v12 }
0x10fc   :  { %v1475_v19 = vmul.f32 %v1674_v10, %v1474_v13 }
0x10fe   :  { %v1476_v28 = vadd.f32 %v1674_v10, %v1475_v19 }
0x1100   :  { %v1480_v1 = vsel %vm1479_vm11, %v1674_v10, %v1476_v28 }
0x1101   :  { %v1485_v8 = vsel %vm1482_vm12, %v1484_v31, %v1480_v1 }
0x1102   :  { %v1486_v35 = vmul.f32 %v1672_v3, %v1485_v8 }
0x1104   :  { %1487 = vst.msk [vmem:[%s2406_s6] sm:$0xff] %vm1462_vm9, %v1486_v35 }
0x1105   :  { %1492 = vsyncpa [#allocation5], 1 }

</bundles_post_ra>
